<compile_context>
chip_gen: v7x
topology: tpu7x:2x2x1
jax: 0.10.0
libtpu: 0.0.40
codegen_flags: <defaults>
</compile_context>

<pallas_src>
import functools

import numpy as np
import jax
import jax.numpy as jnp
from jax import lax
from jax.experimental import pallas as pl
from jax.experimental.pallas import tpu as pltpu

NEG_INF = -1e30          # python float -> inlined literal, NOT a captured const


# ------------------------------ fused kernel ---------------------------------

def _hard_gao_block(feat, adj_b, p, wfc, w_lr, head_mask, wres, mean_mat, *,
                    num_heads, out_feats, k, neg_slope, use_elu,
                    use_residual, mean_heads):
    """One HardGAO layer, traced inside the fused kernel.

    feat      : (N, F_in)   node features (VMEM-resident values)
    adj_b     : (N, N)      boolean adjacency, adj_b[dst, src] (hoisted once)
    p         : (1, F_in)   node-score projection
    wfc       : (F_in, H*F) fc weight (input-major, head-major columns)
    w_lr      : (2H, H*F)   rows 0..H-1: block-structured attn_l,
                            rows H..2H-1: block-structured attn_r
    head_mask : (H, H*F)    head_mask[h, h'*F+f] = (h == h')
    wres      : (F_in, H*F) residual Linear weight, or None
    mean_mat  : (H*F, F)    (f==f')/H averaging matrix, or None
    returns   : (N, H*F) head-major columns, or (N, F) if mean_heads
    """
    H, F = num_heads, out_feats
    N = feat.shape[0]

    # ---- node score y = |p . x| / ||p||_2 (per-src row and per-dst column) ---
    inv_pnorm = lax.rsqrt(jnp.sum(p * p))
    y_col = jnp.abs(jnp.sum(feat * p, axis=-1, keepdims=True)) * inv_pnorm   # (N,1)
    y_row = jnp.abs(lax.dot_general(
        p, feat, (((1,), (1,)), ((), ())),
        preferred_element_type=jnp.float32)) * inv_pnorm                     # (1,N)

    # ---- hard attention: keep the top-k in-edges per destination node -------
    # (dgl copy_u('y') + select_topk).
    # TODO(synk): ties at the k-th score keep all tied edges (dgl keeps exactly k).
    rem = jnp.where(adj_b, y_row, NEG_INF)                 # (N_dst, N_src)
    sel = None
    for _ in range(k):                                     # k is small & static
        m = jnp.max(rem, axis=-1, keepdims=True)
        pick = jnp.logical_and(rem >= m, m > 0.5 * NEG_INF)
        sel = pick if sel is None else jnp.logical_or(sel, pick)
        rem = jnp.where(pick, NEG_INF, rem)

    # ---- gate node features by sigmoid(y); feat_drop(p=0.0) is identity -----
    sig = pl.reciprocal(1.0 + jnp.exp(-y_col), approx=True)
    feat_s = sig * feat                                    # (N, F_in)

    # ---- fc over ALL heads in one wide matmul --------------------------------
    hh_all = jnp.dot(feat_s, wfc, preferred_element_type=jnp.float32)        # (N, H*F)

    # ---- el / er for every head from ONE matmul ------------------------------
    #   lr[h,   s] = sum_f attn_l[h,f] * hh[s, h*F+f]  (= el[s,h])
    #   lr[H+h, d] = sum_f attn_r[h,f] * hh[d, h*F+f]  (= er[d,h])
    lr = lax.dot_general(w_lr, hh_all, (((1,), (1,)), ((), ())),
                         preferred_element_type=jnp.float32)                 # (2H, N)
    el_hs = lr[:H]                                         # (H, N_src)
    er_hd = lr[H:]                                         # (H, N_dst)

    # ---- head-BATCHED leaky-relu + edge mask + softmax (ONE pass) ------------
    e = er_hd[:, :, None] + el_hs[:, None, :]              # e[h,dst,src] = er+el
    e = jnp.where(e > 0, e, neg_slope * e)                 # leaky_relu
    e = jnp.where(sel[None, :, :], e, NEG_INF)             # keep selected edges
    e_max = jnp.max(e, axis=-1, keepdims=True)
    pexp = jnp.exp(e - e_max)
    denom = jnp.sum(pexp, axis=-1, keepdims=True)
    a = pexp * pl.reciprocal(jnp.maximum(denom, 1e-30), approx=True)         # (H,Nd,Ns)

    # ---- aggregation: ONE matmul for all heads -------------------------------
    # (H*N, N) @ (N, H*F) produces every (head_a, head_b) block; the masked
    # head-sum keeps only the diagonal blocks and lands the result lane-dense
    # as (N, H*F) head-major — no transposes, no concatenate.
    out2 = jnp.dot(a.reshape(H * N, N), hh_all,
                   preferred_element_type=jnp.float32)                       # (H*N, H*F)
    out = jnp.sum(out2.reshape(H, N, H * F) * head_mask[:, None, :], axis=0) # (N, H*F)

    if use_elu:                                            # F.elu, alpha=1
        # exp(min(x,0))-1; expm1 would be marginally tighter numerically.
        out = jnp.where(out > 0, out, jnp.exp(jnp.minimum(out, 0.0)) - 1.0)
    if use_residual:                                       # Linear residual on gated feat
        out = out + jnp.dot(feat_s, wres, preferred_element_type=jnp.float32)
    if mean_heads:                                         # final .mean(1) over heads
        out = jnp.dot(out, mean_mat, preferred_element_type=jnp.float32)     # (N, F)
    return out


def _hard_gat_kernel(*refs, layer_cfgs):
    """Whole HardGAT network: feat, adj, all layer params in; logits out."""
    feat_ref, adj_ref = refs[0], refs[1]
    out_ref = refs[-1]
    param_refs = refs[2:-1]

    adj_b = adj_ref[...] > 0.5                 # hoisted: shared by all layers
    h = feat_ref[...]
    i = 0
    for cfg in layer_cfgs:
        n = 4 + int(cfg["use_residual"]) + int(cfg["mean_heads"])
        vals = [r[...] for r in param_refs[i:i + n]]
        i += n
        p, wfc, w_lr, head_mask = vals[:4]
        idx = 4
        wres = None
        if cfg["use_residual"]:
            wres = vals[idx]; idx += 1
        mean_mat = None
        if cfg["mean_heads"]:
            mean_mat = vals[idx]; idx += 1
        h = _hard_gao_block(h, adj_b, p, wfc, w_lr, head_mask, wres, mean_mat,
                            **cfg)
    out_ref[...] = h


# ------------------------------ python wrapper --------------------------------

def _attn_lr_rows(attn_l, attn_r):
    """(2H, H*F) block matrix: one matmul gives el and er for every head."""
    H, F = attn_l.shape
    eye = jnp.eye(H, dtype=attn_l.dtype)
    al_rows = (eye[:, :, None] * attn_l[None, :, :]).reshape(H, H * F)   # (H, H*F)
    ar_rows = (eye[:, :, None] * attn_r[None, :, :]).reshape(H, H * F)   # (H, H*F)
    return jnp.concatenate([al_rows, ar_rows], axis=0)                   # (2H, H*F)


def hard_gat_forward(feat, adj, layers):
    """Run the whole HardGAT network in ONE fused Pallas kernel."""
    N = feat.shape[0]
    last_cfg = layers[-1][0]
    out_dim = (last_cfg["out_feats"] if last_cfg["mean_heads"]
               else last_cfg["num_heads"] * last_cfg["out_feats"])

    inputs = [feat, adj]
    cfgs = []
    for cfg, params in layers:
        H, F = cfg["num_heads"], cfg["out_feats"]
        w_lr = _attn_lr_rows(params["attn_l"], params["attn_r"])          # (2H, H*F)
        head_mask = jnp.repeat(jnp.eye(H, dtype=jnp.float32), F, axis=1)  # (H, H*F)
        inputs += [params["p"], params["w_fc"], w_lr, head_mask]
        if cfg["use_residual"]:
            inputs.append(params["w_res"])
        if cfg["mean_heads"]:
            mean_mat = jnp.tile(jnp.eye(F, dtype=jnp.float32), (H, 1)) / H  # (H*F, F)
            inputs.append(mean_mat)
        cfgs.append(dict(cfg))

    kernel = functools.partial(_hard_gat_kernel, layer_cfgs=tuple(cfgs))
    return pl.pallas_call(
        kernel,
        out_shape=jax.ShapeDtypeStruct((N, out_dim), jnp.float32),
        in_specs=[pl.BlockSpec(memory_space=pltpu.MemorySpace.VMEM)
                  for _ in inputs],
        out_specs=pl.BlockSpec(memory_space=pltpu.MemorySpace.VMEM),
    )(*inputs)


# ----------------------- deterministic parameter init -------------------------

def _xavier(key, shape, fan_in, fan_out, gain=float(np.sqrt(2.0))):
    std = gain * np.sqrt(2.0 / (fan_in + fan_out))
    return (std * jax.random.normal(key, shape)).astype(jnp.float32)


def init_hard_gao(key, in_feats, out_feats, num_heads, residual):
    ks = jax.random.split(key, 5)
    params = {
        "w_fc": _xavier(ks[0], (in_feats, out_feats * num_heads),
                        in_feats, out_feats * num_heads),
        "attn_l": _xavier(ks[1], (num_heads, out_feats), out_feats, num_heads),
        "attn_r": _xavier(ks[2], (num_heads, out_feats), out_feats, num_heads),
        "p": _xavier(ks[3], (1, in_feats), in_feats, 1),
    }
    if residual:
        # in_feats != out_feats for every residual layer in this config, so
        # the residual module is always a Linear (Identity branch unused).
        params["w_res"] = _xavier(ks[4], (in_feats, out_feats * num_heads),
                                  in_feats, out_feats * num_heads)
    return params


# ----------------------------- pure-JAX reference ------------------------------

def ref_hard_gao(feat, adj, params, *, num_heads, out_feats, k,
                 neg_slope, use_elu, use_residual, mean_heads):
    N = feat.shape[0]
    p = params["p"]
    y = jnp.abs(feat @ p[0]) / jnp.linalg.norm(p)                  # (N,)
    scores = jnp.where(adj > 0.5, y[None, :], -jnp.inf)
    vals, idx = lax.top_k(scores, k)
    keep = (vals > -jnp.inf).astype(jnp.float32)
    sel = (jax.nn.one_hot(idx, N) * keep[..., None]).sum(axis=1)   # (N, N)
    feat_s = jax.nn.sigmoid(y)[:, None] * feat
    h = (feat_s @ params["w_fc"]).reshape(N, num_heads, out_feats)
    el = (h * params["attn_l"][None]).sum(-1)                      # (N, H)
    er = (h * params["attn_r"][None]).sum(-1)                      # (N, H)
    e = er[:, None, :] + el[None, :, :]                            # (dst, src, H)
    e = jnp.where(e > 0, e, neg_slope * e)
    e = jnp.where(sel[:, :, None] > 0.5, e, -jnp.inf)
    a = jax.nn.softmax(e, axis=1)
    rst = jnp.einsum("dsh,shf->dhf", a, h)
    if use_elu:
        rst = jnp.where(rst > 0, rst, jnp.expm1(jnp.minimum(rst, 0.0)))
    if use_residual:
        rst = rst + (feat_s @ params["w_res"]).reshape(N, num_heads, out_feats)
    if mean_heads:
        return rst.mean(axis=1)
    return rst.reshape(N, num_heads * out_feats)


def ref_hard_gat(feat, adj, layers):
    h = feat
    for cfg, params in layers:
        h = ref_hard_gao(h, adj, params, **cfg)
    return h


# ------------------------------------- main ------------------------------------

if __name__ == "__main__":
    key = jax.random.PRNGKey(0)
    N, in_dim, num_hidden, num_classes = 16, 16, 16, 8
    heads = [4, 4, 2]      # HardGAT(num_layers=2, heads=[4, 4, 2], residual=True)
    k = 4
    neg_slope = 0.2

    k_feat, k_adj, k0, k1, k2 = jax.random.split(key, 5)

    # input node features and a random directed graph with self-loops
    feat = jax.random.normal(k_feat, (N, in_dim), dtype=jnp.float32)
    adj = jax.random.bernoulli(k_adj, 0.35, (N, N)).astype(jnp.float32)
    adj = jnp.maximum(adj, jnp.eye(N, dtype=jnp.float32))   # in_degree >= 1

    common = dict(k=k, neg_slope=neg_slope)
    layers = [
        # HardGAO(in_dim, num_hidden, heads[0], residual=False, activation=elu)
        (dict(num_heads=heads[0], out_feats=num_hidden, use_elu=True,
              use_residual=False, mean_heads=False, **common),
         init_hard_gao(k0, in_dim, num_hidden, heads[0], residual=False)),
        # HardGAO(num_hidden*heads[0], num_hidden, heads[1], residual=True, activation=elu)
        (dict(num_heads=heads[1], out_feats=num_hidden, use_elu=True,
              use_residual=True, mean_heads=False, **common),
         init_hard_gao(k1, num_hidden * heads[0], num_hidden, heads[1],
                       residual=True)),
        # HardGAO(num_hidden*heads[1], num_classes, heads[2], residual=False,
        #         activation=None), followed by .mean(1) over heads -> logits
        (dict(num_heads=heads[2], out_feats=num_classes, use_elu=False,
              use_residual=False, mean_heads=True, **common),
         init_hard_gao(k2, num_hidden * heads[1], num_classes, heads[2],
                       residual=False)),
    ]

    logits = hard_gat_forward(feat, adj, layers)
    logits = jax.block_until_ready(logits)

    ref = ref_hard_gat(feat, adj, layers)
    assert logits.shape == (N, num_classes), logits.shape
    np.testing.assert_allclose(np.asarray(logits), np.asarray(ref),
                               rtol=3e-2, atol=3e-2)
    print("KERNEL_OK")
</pallas_src>

<mosaic_0001>
module attributes {stable_mosaic.version = 11 : i64} {
  func.func @_hard_gat_kernel(%arg0: memref<16x16xf32, #tpu.memory_space<vmem>>, %arg1: memref<16x16xf32, #tpu.memory_space<vmem>>, %arg2: memref<1x16xf32, #tpu.memory_space<vmem>>, %arg3: memref<16x64xf32, #tpu.memory_space<vmem>>, %arg4: memref<8x64xf32, #tpu.memory_space<vmem>>, %arg5: memref<4x64xf32, #tpu.memory_space<vmem>>, %arg6: memref<1x64xf32, #tpu.memory_space<vmem>>, %arg7: memref<64x64xf32, #tpu.memory_space<vmem>>, %arg8: memref<8x64xf32, #tpu.memory_space<vmem>>, %arg9: memref<4x64xf32, #tpu.memory_space<vmem>>, %arg10: memref<64x64xf32, #tpu.memory_space<vmem>>, %arg11: memref<1x64xf32, #tpu.memory_space<vmem>>, %arg12: memref<64x16xf32, #tpu.memory_space<vmem>>, %arg13: memref<4x16xf32, #tpu.memory_space<vmem>>, %arg14: memref<2x16xf32, #tpu.memory_space<vmem>>, %arg15: memref<16x8xf32, #tpu.memory_space<vmem>>, %arg16: memref<16x8xf32, #tpu.memory_space<vmem>>) attributes {dimension_semantics = [], scalar_prefetch = 0 : i64, scratch_operands = 0 : i64, tpu.core_type = #tpu.core_type<tc>} {
    %c0 = arith.constant 0 : index
    %c0_0 = arith.constant 0 : index
    %0 = vector.load %arg1[%c0, %c0_0] : memref<16x16xf32, #tpu.memory_space<vmem>>, vector<16x16xf32>
    %cst = arith.constant 5.000000e-01 : f32
    %1 = vector.broadcast %cst : f32 to vector<16x16xf32>
    %2 = arith.cmpf ogt, %0, %1 : vector<16x16xf32>
    %c0_1 = arith.constant 0 : index
    %c0_2 = arith.constant 0 : index
    %3 = vector.load %arg0[%c0_1, %c0_2] : memref<16x16xf32, #tpu.memory_space<vmem>>, vector<16x16xf32>
    %c0_3 = arith.constant 0 : index
    %c0_4 = arith.constant 0 : index
    %4 = vector.load %arg2[%c0_3, %c0_4] : memref<1x16xf32, #tpu.memory_space<vmem>>, vector<1x16xf32>
    %c0_5 = arith.constant 0 : index
    %c0_6 = arith.constant 0 : index
    %5 = vector.load %arg3[%c0_5, %c0_6] : memref<16x64xf32, #tpu.memory_space<vmem>>, vector<16x64xf32>
    %c0_7 = arith.constant 0 : index
    %c0_8 = arith.constant 0 : index
    %6 = vector.load %arg4[%c0_7, %c0_8] : memref<8x64xf32, #tpu.memory_space<vmem>>, vector<8x64xf32>
    %c0_9 = arith.constant 0 : index
    %c0_10 = arith.constant 0 : index
    %7 = vector.load %arg5[%c0_9, %c0_10] : memref<4x64xf32, #tpu.memory_space<vmem>>, vector<4x64xf32>
    %8 = arith.mulf %4, %4 : vector<1x16xf32>
    %9 = vector.shape_cast %8 : vector<1x16xf32> to vector<1x1x16xf32>
    %cst_11 = arith.constant dense<0.000000e+00> : vector<1xf32>
    %10 = vector.multi_reduction <add>, %9, %cst_11 [1, 2] : vector<1x1x16xf32> to vector<1xf32>
    %11 = vector.shape_cast %10 : vector<1xf32> to vector<1x1x1xf32>
    %12 = vector.extract %11[0, 0, 0] : f32 from vector<1x1x1xf32>
    %13 = math.rsqrt %12 : f32
    %14 = vector.broadcast %4 : vector<1x16xf32> to vector<16x16xf32>
    %15 = arith.mulf %3, %14 : vector<16x16xf32>
    %cst_12 = arith.constant dense<0.000000e+00> : vector<16xf32>
    %16 = vector.multi_reduction <add>, %15, %cst_12 [1] : vector<16x16xf32> to vector<16xf32>
    %17 = vector.shape_cast %16 : vector<16xf32> to vector<16x1xf32>
    %18 = math.absf %17 : vector<16x1xf32>
    %19 = vector.broadcast %13 : f32 to vector<16x1xf32>
    %20 = arith.mulf %18, %19 : vector<16x1xf32>
    %cst_13 = arith.constant dense<0.000000e+00> : vector<1x16xf32>
    %21 = tpu.matmul %4, %3, %cst_13 {dimension_numbers = #tpu.dot_dimension_numbers<[1], [1], [0], [0], [0, 0, 1, 0], [], []>} : vector<1x16xf32>, vector<16x16xf32>, vector<1x16xf32> -> vector<1x16xf32>
    %22 = math.absf %21 : vector<1x16xf32>
    %23 = vector.broadcast %13 : f32 to vector<1x16xf32>
    %24 = arith.mulf %22, %23 : vector<1x16xf32>
    %cst_14 = arith.constant -1.000000e+30 : f32
    %25 = vector.shape_cast %24 : vector<1x16xf32> to vector<1x16xf32>
    %26 = vector.broadcast %25 : vector<1x16xf32> to vector<16x16xf32>
    %27 = vector.broadcast %cst_14 : f32 to vector<16x16xf32>
    %28 = arith.select %2, %26, %27 : vector<16x16xi1>, vector<16x16xf32>
    %cst_15 = arith.constant dense<0xFF800000> : vector<16xf32>
    %29 = vector.multi_reduction <maximumf>, %28, %cst_15 [1] : vector<16x16xf32> to vector<16xf32>
    %30 = vector.shape_cast %29 : vector<16xf32> to vector<16x1xf32>
    %31 = vector.broadcast %30 : vector<16x1xf32> to vector<16x16xf32>
    %32 = arith.cmpf oge, %28, %31 : vector<16x16xf32>
    %cst_16 = arith.constant -5.000000e+29 : f32
    %33 = vector.broadcast %cst_16 : f32 to vector<16x1xf32>
    %34 = arith.cmpf ogt, %30, %33 : vector<16x1xf32>
    %35 = vector.broadcast %34 : vector<16x1xi1> to vector<16x16xi1>
    %36 = arith.andi %32, %35 : vector<16x16xi1>
    %cst_17 = arith.constant -1.000000e+30 : f32
    %37 = vector.broadcast %cst_17 : f32 to vector<16x16xf32>
    %38 = arith.select %36, %37, %28 : vector<16x16xi1>, vector<16x16xf32>
    %cst_18 = arith.constant dense<0xFF800000> : vector<16xf32>
    %39 = vector.multi_reduction <maximumf>, %38, %cst_18 [1] : vector<16x16xf32> to vector<16xf32>
    %40 = vector.shape_cast %39 : vector<16xf32> to vector<16x1xf32>
    %41 = vector.broadcast %40 : vector<16x1xf32> to vector<16x16xf32>
    %42 = arith.cmpf oge, %38, %41 : vector<16x16xf32>
    %cst_19 = arith.constant -5.000000e+29 : f32
    %43 = vector.broadcast %cst_19 : f32 to vector<16x1xf32>
    %44 = arith.cmpf ogt, %40, %43 : vector<16x1xf32>
    %45 = vector.broadcast %44 : vector<16x1xi1> to vector<16x16xi1>
    %46 = arith.andi %42, %45 : vector<16x16xi1>
    %47 = arith.ori %36, %46 : vector<16x16xi1>
    %cst_20 = arith.constant -1.000000e+30 : f32
    %48 = vector.broadcast %cst_20 : f32 to vector<16x16xf32>
    %49 = arith.select %46, %48, %38 : vector<16x16xi1>, vector<16x16xf32>
    %cst_21 = arith.constant dense<0xFF800000> : vector<16xf32>
    %50 = vector.multi_reduction <maximumf>, %49, %cst_21 [1] : vector<16x16xf32> to vector<16xf32>
    %51 = vector.shape_cast %50 : vector<16xf32> to vector<16x1xf32>
    %52 = vector.broadcast %51 : vector<16x1xf32> to vector<16x16xf32>
    %53 = arith.cmpf oge, %49, %52 : vector<16x16xf32>
    %cst_22 = arith.constant -5.000000e+29 : f32
    %54 = vector.broadcast %cst_22 : f32 to vector<16x1xf32>
    %55 = arith.cmpf ogt, %51, %54 : vector<16x1xf32>
    %56 = vector.broadcast %55 : vector<16x1xi1> to vector<16x16xi1>
    %57 = arith.andi %53, %56 : vector<16x16xi1>
    %58 = arith.ori %47, %57 : vector<16x16xi1>
    %cst_23 = arith.constant -1.000000e+30 : f32
    %59 = vector.broadcast %cst_23 : f32 to vector<16x16xf32>
    %60 = arith.select %57, %59, %49 : vector<16x16xi1>, vector<16x16xf32>
    %cst_24 = arith.constant dense<0xFF800000> : vector<16xf32>
    %61 = vector.multi_reduction <maximumf>, %60, %cst_24 [1] : vector<16x16xf32> to vector<16xf32>
    %62 = vector.shape_cast %61 : vector<16xf32> to vector<16x1xf32>
    %63 = vector.broadcast %62 : vector<16x1xf32> to vector<16x16xf32>
    %64 = arith.cmpf oge, %60, %63 : vector<16x16xf32>
    %cst_25 = arith.constant -5.000000e+29 : f32
    %65 = vector.broadcast %cst_25 : f32 to vector<16x1xf32>
    %66 = arith.cmpf ogt, %62, %65 : vector<16x1xf32>
    %67 = vector.broadcast %66 : vector<16x1xi1> to vector<16x16xi1>
    %68 = arith.andi %64, %67 : vector<16x16xi1>
    %69 = arith.ori %58, %68 : vector<16x16xi1>
    %cst_26 = arith.constant 0.000000e+00 : f32
    %70 = vector.broadcast %cst_26 : f32 to vector<16x1xf32>
    %71 = arith.subf %70, %20 : vector<16x1xf32>
    %72 = math.exp %71 : vector<16x1xf32>
    %cst_27 = arith.constant 1.000000e+00 : f32
    %73 = vector.broadcast %cst_27 : f32 to vector<16x1xf32>
    %74 = arith.addf %73, %72 : vector<16x1xf32>
    %75 = tpu.reciprocal %74 {approx = true} : vector<16x1xf32> -> vector<16x1xf32>
    %76 = vector.broadcast %75 : vector<16x1xf32> to vector<16x16xf32>
    %77 = arith.mulf %76, %3 : vector<16x16xf32>
    %cst_28 = arith.constant dense<0.000000e+00> : vector<16x64xf32>
    %78 = tpu.matmul %77, %5, %cst_28 {dimension_numbers = #tpu.dot_dimension_numbers<[1], [0], [0], [1], [0, 0, 1, 1], [], []>} : vector<16x16xf32>, vector<16x64xf32>, vector<16x64xf32> -> vector<16x64xf32>
    %cst_29 = arith.constant dense<0.000000e+00> : vector<8x16xf32>
    %79 = tpu.matmul %6, %78, %cst_29 {dimension_numbers = #tpu.dot_dimension_numbers<[1], [1], [0], [0], [0, 0, 1, 0], [], []>} : vector<8x64xf32>, vector<16x64xf32>, vector<8x16xf32> -> vector<8x16xf32>
    %80 = vector.extract_strided_slice %79 {offsets = [0, 0], sizes = [4, 16], strides = [1, 1]} : vector<8x16xf32> to vector<4x16xf32>
    %81 = vector.extract_strided_slice %79 {offsets = [4, 0], sizes = [4, 16], strides = [1, 1]} : vector<8x16xf32> to vector<4x16xf32>
    %82 = vector.shape_cast %81 : vector<4x16xf32> to vector<4x16x1xf32>
    %83 = vector.shape_cast %80 : vector<4x16xf32> to vector<4x1x16xf32>
    %84 = vector.broadcast %82 : vector<4x16x1xf32> to vector<4x16x16xf32>
    %85 = vector.broadcast %83 : vector<4x1x16xf32> to vector<4x16x16xf32>
    %86 = arith.addf %84, %85 : vector<4x16x16xf32>
    %cst_30 = arith.constant 0.000000e+00 : f32
    %87 = vector.broadcast %cst_30 : f32 to vector<4x16x16xf32>
    %88 = arith.cmpf ogt, %86, %87 : vector<4x16x16xf32>
    %cst_31 = arith.constant 2.000000e-01 : f32
    %89 = vector.broadcast %cst_31 : f32 to vector<4x16x16xf32>
    %90 = arith.mulf %89, %86 : vector<4x16x16xf32>
    %91 = arith.select %88, %86, %90 : vector<4x16x16xi1>, vector<4x16x16xf32>
    %92 = vector.shape_cast %69 : vector<16x16xi1> to vector<1x16x16xi1>
    %cst_32 = arith.constant -1.000000e+30 : f32
    %93 = vector.shape_cast %92 : vector<1x16x16xi1> to vector<1x16x16xi1>
    %94 = vector.broadcast %93 : vector<1x16x16xi1> to vector<4x16x16xi1>
    %95 = vector.broadcast %cst_32 : f32 to vector<4x16x16xf32>
    %96 = arith.select %94, %91, %95 : vector<4x16x16xi1>, vector<4x16x16xf32>
    %cst_33 = arith.constant dense<0xFF800000> : vector<4x16xf32>
    %97 = vector.multi_reduction <maximumf>, %96, %cst_33 [2] : vector<4x16x16xf32> to vector<4x16xf32>
    %98 = vector.shape_cast %97 : vector<4x16xf32> to vector<4x16x1xf32>
    %99 = vector.broadcast %98 : vector<4x16x1xf32> to vector<4x16x16xf32>
    %100 = arith.subf %96, %99 : vector<4x16x16xf32>
    %101 = math.exp %100 : vector<4x16x16xf32>
    %cst_34 = arith.constant dense<0.000000e+00> : vector<4x16xf32>
    %102 = vector.multi_reduction <add>, %101, %cst_34 [2] : vector<4x16x16xf32> to vector<4x16xf32>
    %103 = vector.shape_cast %102 : vector<4x16xf32> to vector<4x16x1xf32>
    %cst_35 = arith.constant 1.000000e-30 : f32
    %104 = vector.broadcast %cst_35 : f32 to vector<4x16x1xf32>
    %105 = arith.maximumf %103, %104 : vector<4x16x1xf32>
    %106 = tpu.reciprocal %105 {approx = true} : vector<4x16x1xf32> -> vector<4x16x1xf32>
    %107 = vector.broadcast %106 : vector<4x16x1xf32> to vector<4x16x16xf32>
    %108 = arith.mulf %101, %107 : vector<4x16x16xf32>
    %109 = vector.shape_cast %108 : vector<4x16x16xf32> to vector<64x16xf32>
    %cst_36 = arith.constant dense<0.000000e+00> : vector<64x64xf32>
    %110 = tpu.matmul %109, %78, %cst_36 {dimension_numbers = #tpu.dot_dimension_numbers<[1], [0], [0], [1], [0, 0, 1, 1], [], []>} : vector<64x16xf32>, vector<16x64xf32>, vector<64x64xf32> -> vector<64x64xf32>
    %111 = vector.shape_cast %110 : vector<64x64xf32> to vector<4x16x64xf32>
    %112 = vector.shape_cast %7 : vector<4x64xf32> to vector<4x1x64xf32>
    %113 = vector.broadcast %112 : vector<4x1x64xf32> to vector<4x16x64xf32>
    %114 = arith.mulf %111, %113 : vector<4x16x64xf32>
    %cst_37 = arith.constant dense<0.000000e+00> : vector<16x64xf32>
    %115 = vector.multi_reduction <add>, %114, %cst_37 [0] : vector<4x16x64xf32> to vector<16x64xf32>
    %cst_38 = arith.constant 0.000000e+00 : f32
    %116 = vector.broadcast %cst_38 : f32 to vector<16x64xf32>
    %117 = arith.cmpf ogt, %115, %116 : vector<16x64xf32>
    %cst_39 = arith.constant 0.000000e+00 : f32
    %118 = vector.broadcast %cst_39 : f32 to vector<16x64xf32>
    %119 = arith.minimumf %115, %118 : vector<16x64xf32>
    %120 = math.exp %119 : vector<16x64xf32>
    %cst_40 = arith.constant 1.000000e+00 : f32
    %121 = vector.broadcast %cst_40 : f32 to vector<16x64xf32>
    %122 = arith.subf %120, %121 : vector<16x64xf32>
    %123 = arith.select %117, %115, %122 : vector<16x64xi1>, vector<16x64xf32>
    %c0_41 = arith.constant 0 : index
    %c0_42 = arith.constant 0 : index
    %124 = vector.load %arg6[%c0_41, %c0_42] : memref<1x64xf32, #tpu.memory_space<vmem>>, vector<1x64xf32>
    %c0_43 = arith.constant 0 : index
    %c0_44 = arith.constant 0 : index
    %125 = vector.load %arg7[%c0_43, %c0_44] : memref<64x64xf32, #tpu.memory_space<vmem>>, vector<64x64xf32>
    %c0_45 = arith.constant 0 : index
    %c0_46 = arith.constant 0 : index
    %126 = vector.load %arg8[%c0_45, %c0_46] : memref<8x64xf32, #tpu.memory_space<vmem>>, vector<8x64xf32>
    %c0_47 = arith.constant 0 : index
    %c0_48 = arith.constant 0 : index
    %127 = vector.load %arg9[%c0_47, %c0_48] : memref<4x64xf32, #tpu.memory_space<vmem>>, vector<4x64xf32>
    %c0_49 = arith.constant 0 : index
    %c0_50 = arith.constant 0 : index
    %128 = vector.load %arg10[%c0_49, %c0_50] : memref<64x64xf32, #tpu.memory_space<vmem>>, vector<64x64xf32>
    %129 = arith.mulf %124, %124 : vector<1x64xf32>
    %130 = vector.shape_cast %129 : vector<1x64xf32> to vector<1x1x64xf32>
    %cst_51 = arith.constant dense<0.000000e+00> : vector<1xf32>
    %131 = vector.multi_reduction <add>, %130, %cst_51 [1, 2] : vector<1x1x64xf32> to vector<1xf32>
    %132 = vector.shape_cast %131 : vector<1xf32> to vector<1x1x1xf32>
    %133 = vector.extract %132[0, 0, 0] : f32 from vector<1x1x1xf32>
    %134 = math.rsqrt %133 : f32
    %135 = vector.broadcast %124 : vector<1x64xf32> to vector<16x64xf32>
    %136 = arith.mulf %123, %135 : vector<16x64xf32>
    %cst_52 = arith.constant dense<0.000000e+00> : vector<16xf32>
    %137 = vector.multi_reduction <add>, %136, %cst_52 [1] : vector<16x64xf32> to vector<16xf32>
    %138 = vector.shape_cast %137 : vector<16xf32> to vector<16x1xf32>
    %139 = math.absf %138 : vector<16x1xf32>
    %140 = vector.broadcast %134 : f32 to vector<16x1xf32>
    %141 = arith.mulf %139, %140 : vector<16x1xf32>
    %cst_53 = arith.constant dense<0.000000e+00> : vector<1x16xf32>
    %142 = tpu.matmul %124, %123, %cst_53 {dimension_numbers = #tpu.dot_dimension_numbers<[1], [1], [0], [0], [0, 0, 1, 0], [], []>} : vector<1x64xf32>, vector<16x64xf32>, vector<1x16xf32> -> vector<1x16xf32>
    %143 = math.absf %142 : vector<1x16xf32>
    %144 = vector.broadcast %134 : f32 to vector<1x16xf32>
    %145 = arith.mulf %143, %144 : vector<1x16xf32>
    %cst_54 = arith.constant -1.000000e+30 : f32
    %146 = vector.shape_cast %145 : vector<1x16xf32> to vector<1x16xf32>
    %147 = vector.broadcast %146 : vector<1x16xf32> to vector<16x16xf32>
    %148 = vector.broadcast %cst_54 : f32 to vector<16x16xf32>
    %149 = arith.select %2, %147, %148 : vector<16x16xi1>, vector<16x16xf32>
    %cst_55 = arith.constant dense<0xFF800000> : vector<16xf32>
    %150 = vector.multi_reduction <maximumf>, %149, %cst_55 [1] : vector<16x16xf32> to vector<16xf32>
    %151 = vector.shape_cast %150 : vector<16xf32> to vector<16x1xf32>
    %152 = vector.broadcast %151 : vector<16x1xf32> to vector<16x16xf32>
    %153 = arith.cmpf oge, %149, %152 : vector<16x16xf32>
    %cst_56 = arith.constant -5.000000e+29 : f32
    %154 = vector.broadcast %cst_56 : f32 to vector<16x1xf32>
    %155 = arith.cmpf ogt, %151, %154 : vector<16x1xf32>
    %156 = vector.broadcast %155 : vector<16x1xi1> to vector<16x16xi1>
    %157 = arith.andi %153, %156 : vector<16x16xi1>
    %cst_57 = arith.constant -1.000000e+30 : f32
    %158 = vector.broadcast %cst_57 : f32 to vector<16x16xf32>
    %159 = arith.select %157, %158, %149 : vector<16x16xi1>, vector<16x16xf32>
    %cst_58 = arith.constant dense<0xFF800000> : vector<16xf32>
    %160 = vector.multi_reduction <maximumf>, %159, %cst_58 [1] : vector<16x16xf32> to vector<16xf32>
    %161 = vector.shape_cast %160 : vector<16xf32> to vector<16x1xf32>
    %162 = vector.broadcast %161 : vector<16x1xf32> to vector<16x16xf32>
    %163 = arith.cmpf oge, %159, %162 : vector<16x16xf32>
    %cst_59 = arith.constant -5.000000e+29 : f32
    %164 = vector.broadcast %cst_59 : f32 to vector<16x1xf32>
    %165 = arith.cmpf ogt, %161, %164 : vector<16x1xf32>
    %166 = vector.broadcast %165 : vector<16x1xi1> to vector<16x16xi1>
    %167 = arith.andi %163, %166 : vector<16x16xi1>
    %168 = arith.ori %157, %167 : vector<16x16xi1>
    %cst_60 = arith.constant -1.000000e+30 : f32
    %169 = vector.broadcast %cst_60 : f32 to vector<16x16xf32>
    %170 = arith.select %167, %169, %159 : vector<16x16xi1>, vector<16x16xf32>
    %cst_61 = arith.constant dense<0xFF800000> : vector<16xf32>
    %171 = vector.multi_reduction <maximumf>, %170, %cst_61 [1] : vector<16x16xf32> to vector<16xf32>
    %172 = vector.shape_cast %171 : vector<16xf32> to vector<16x1xf32>
    %173 = vector.broadcast %172 : vector<16x1xf32> to vector<16x16xf32>
    %174 = arith.cmpf oge, %170, %173 : vector<16x16xf32>
    %cst_62 = arith.constant -5.000000e+29 : f32
    %175 = vector.broadcast %cst_62 : f32 to vector<16x1xf32>
    %176 = arith.cmpf ogt, %172, %175 : vector<16x1xf32>
    %177 = vector.broadcast %176 : vector<16x1xi1> to vector<16x16xi1>
    %178 = arith.andi %174, %177 : vector<16x16xi1>
    %179 = arith.ori %168, %178 : vector<16x16xi1>
    %cst_63 = arith.constant -1.000000e+30 : f32
    %180 = vector.broadcast %cst_63 : f32 to vector<16x16xf32>
    %181 = arith.select %178, %180, %170 : vector<16x16xi1>, vector<16x16xf32>
    %cst_64 = arith.constant dense<0xFF800000> : vector<16xf32>
    %182 = vector.multi_reduction <maximumf>, %181, %cst_64 [1] : vector<16x16xf32> to vector<16xf32>
    %183 = vector.shape_cast %182 : vector<16xf32> to vector<16x1xf32>
    %184 = vector.broadcast %183 : vector<16x1xf32> to vector<16x16xf32>
    %185 = arith.cmpf oge, %181, %184 : vector<16x16xf32>
    %cst_65 = arith.constant -5.000000e+29 : f32
    %186 = vector.broadcast %cst_65 : f32 to vector<16x1xf32>
    %187 = arith.cmpf ogt, %183, %186 : vector<16x1xf32>
    %188 = vector.broadcast %187 : vector<16x1xi1> to vector<16x16xi1>
    %189 = arith.andi %185, %188 : vector<16x16xi1>
    %190 = arith.ori %179, %189 : vector<16x16xi1>
    %cst_66 = arith.constant 0.000000e+00 : f32
    %191 = vector.broadcast %cst_66 : f32 to vector<16x1xf32>
    %192 = arith.subf %191, %141 : vector<16x1xf32>
    %193 = math.exp %192 : vector<16x1xf32>
    %cst_67 = arith.constant 1.000000e+00 : f32
    %194 = vector.broadcast %cst_67 : f32 to vector<16x1xf32>
    %195 = arith.addf %194, %193 : vector<16x1xf32>
    %196 = tpu.reciprocal %195 {approx = true} : vector<16x1xf32> -> vector<16x1xf32>
    %197 = vector.broadcast %196 : vector<16x1xf32> to vector<16x64xf32>
    %198 = arith.mulf %197, %123 : vector<16x64xf32>
    %cst_68 = arith.constant dense<0.000000e+00> : vector<16x64xf32>
    %199 = tpu.matmul %198, %125, %cst_68 {dimension_numbers = #tpu.dot_dimension_numbers<[1], [0], [0], [1], [0, 0, 1, 1], [], []>} : vector<16x64xf32>, vector<64x64xf32>, vector<16x64xf32> -> vector<16x64xf32>
    %cst_69 = arith.constant dense<0.000000e+00> : vector<8x16xf32>
    %200 = tpu.matmul %126, %199, %cst_69 {dimension_numbers = #tpu.dot_dimension_numbers<[1], [1], [0], [0], [0, 0, 1, 0], [], []>} : vector<8x64xf32>, vector<16x64xf32>, vector<8x16xf32> -> vector<8x16xf32>
    %201 = vector.extract_strided_slice %200 {offsets = [0, 0], sizes = [4, 16], strides = [1, 1]} : vector<8x16xf32> to vector<4x16xf32>
    %202 = vector.extract_strided_slice %200 {offsets = [4, 0], sizes = [4, 16], strides = [1, 1]} : vector<8x16xf32> to vector<4x16xf32>
    %203 = vector.shape_cast %202 : vector<4x16xf32> to vector<4x16x1xf32>
    %204 = vector.shape_cast %201 : vector<4x16xf32> to vector<4x1x16xf32>
    %205 = vector.broadcast %203 : vector<4x16x1xf32> to vector<4x16x16xf32>
    %206 = vector.broadcast %204 : vector<4x1x16xf32> to vector<4x16x16xf32>
    %207 = arith.addf %205, %206 : vector<4x16x16xf32>
    %cst_70 = arith.constant 0.000000e+00 : f32
    %208 = vector.broadcast %cst_70 : f32 to vector<4x16x16xf32>
    %209 = arith.cmpf ogt, %207, %208 : vector<4x16x16xf32>
    %cst_71 = arith.constant 2.000000e-01 : f32
    %210 = vector.broadcast %cst_71 : f32 to vector<4x16x16xf32>
    %211 = arith.mulf %210, %207 : vector<4x16x16xf32>
    %212 = arith.select %209, %207, %211 : vector<4x16x16xi1>, vector<4x16x16xf32>
    %213 = vector.shape_cast %190 : vector<16x16xi1> to vector<1x16x16xi1>
    %cst_72 = arith.constant -1.000000e+30 : f32
    %214 = vector.shape_cast %213 : vector<1x16x16xi1> to vector<1x16x16xi1>
    %215 = vector.broadcast %214 : vector<1x16x16xi1> to vector<4x16x16xi1>
    %216 = vector.broadcast %cst_72 : f32 to vector<4x16x16xf32>
    %217 = arith.select %215, %212, %216 : vector<4x16x16xi1>, vector<4x16x16xf32>
    %cst_73 = arith.constant dense<0xFF800000> : vector<4x16xf32>
    %218 = vector.multi_reduction <maximumf>, %217, %cst_73 [2] : vector<4x16x16xf32> to vector<4x16xf32>
    %219 = vector.shape_cast %218 : vector<4x16xf32> to vector<4x16x1xf32>
    %220 = vector.broadcast %219 : vector<4x16x1xf32> to vector<4x16x16xf32>
    %221 = arith.subf %217, %220 : vector<4x16x16xf32>
    %222 = math.exp %221 : vector<4x16x16xf32>
    %cst_74 = arith.constant dense<0.000000e+00> : vector<4x16xf32>
    %223 = vector.multi_reduction <add>, %222, %cst_74 [2] : vector<4x16x16xf32> to vector<4x16xf32>
    %224 = vector.shape_cast %223 : vector<4x16xf32> to vector<4x16x1xf32>
    %cst_75 = arith.constant 1.000000e-30 : f32
    %225 = vector.broadcast %cst_75 : f32 to vector<4x16x1xf32>
    %226 = arith.maximumf %224, %225 : vector<4x16x1xf32>
    %227 = tpu.reciprocal %226 {approx = true} : vector<4x16x1xf32> -> vector<4x16x1xf32>
    %228 = vector.broadcast %227 : vector<4x16x1xf32> to vector<4x16x16xf32>
    %229 = arith.mulf %222, %228 : vector<4x16x16xf32>
    %230 = vector.shape_cast %229 : vector<4x16x16xf32> to vector<64x16xf32>
    %cst_76 = arith.constant dense<0.000000e+00> : vector<64x64xf32>
    %231 = tpu.matmul %230, %199, %cst_76 {dimension_numbers = #tpu.dot_dimension_numbers<[1], [0], [0], [1], [0, 0, 1, 1], [], []>} : vector<64x16xf32>, vector<16x64xf32>, vector<64x64xf32> -> vector<64x64xf32>
    %232 = vector.shape_cast %231 : vector<64x64xf32> to vector<4x16x64xf32>
    %233 = vector.shape_cast %127 : vector<4x64xf32> to vector<4x1x64xf32>
    %234 = vector.broadcast %233 : vector<4x1x64xf32> to vector<4x16x64xf32>
    %235 = arith.mulf %232, %234 : vector<4x16x64xf32>
    %cst_77 = arith.constant dense<0.000000e+00> : vector<16x64xf32>
    %236 = vector.multi_reduction <add>, %235, %cst_77 [0] : vector<4x16x64xf32> to vector<16x64xf32>
    %cst_78 = arith.constant 0.000000e+00 : f32
    %237 = vector.broadcast %cst_78 : f32 to vector<16x64xf32>
    %238 = arith.cmpf ogt, %236, %237 : vector<16x64xf32>
    %cst_79 = arith.constant 0.000000e+00 : f32
    %239 = vector.broadcast %cst_79 : f32 to vector<16x64xf32>
    %240 = arith.minimumf %236, %239 : vector<16x64xf32>
    %241 = math.exp %240 : vector<16x64xf32>
    %cst_80 = arith.constant 1.000000e+00 : f32
    %242 = vector.broadcast %cst_80 : f32 to vector<16x64xf32>
    %243 = arith.subf %241, %242 : vector<16x64xf32>
    %244 = arith.select %238, %236, %243 : vector<16x64xi1>, vector<16x64xf32>
    %cst_81 = arith.constant dense<0.000000e+00> : vector<16x64xf32>
    %245 = tpu.matmul %198, %128, %cst_81 {dimension_numbers = #tpu.dot_dimension_numbers<[1], [0], [0], [1], [0, 0, 1, 1], [], []>} : vector<16x64xf32>, vector<64x64xf32>, vector<16x64xf32> -> vector<16x64xf32>
    %246 = arith.addf %244, %245 : vector<16x64xf32>
    %c0_82 = arith.constant 0 : index
    %c0_83 = arith.constant 0 : index
    %247 = vector.load %arg11[%c0_82, %c0_83] : memref<1x64xf32, #tpu.memory_space<vmem>>, vector<1x64xf32>
    %c0_84 = arith.constant 0 : index
    %c0_85 = arith.constant 0 : index
    %248 = vector.load %arg12[%c0_84, %c0_85] : memref<64x16xf32, #tpu.memory_space<vmem>>, vector<64x16xf32>
    %c0_86 = arith.constant 0 : index
    %c0_87 = arith.constant 0 : index
    %249 = vector.load %arg13[%c0_86, %c0_87] : memref<4x16xf32, #tpu.memory_space<vmem>>, vector<4x16xf32>
    %c0_88 = arith.constant 0 : index
    %c0_89 = arith.constant 0 : index
    %250 = vector.load %arg14[%c0_88, %c0_89] : memref<2x16xf32, #tpu.memory_space<vmem>>, vector<2x16xf32>
    %c0_90 = arith.constant 0 : index
    %c0_91 = arith.constant 0 : index
    %251 = vector.load %arg15[%c0_90, %c0_91] : memref<16x8xf32, #tpu.memory_space<vmem>>, vector<16x8xf32>
    %252 = arith.mulf %247, %247 : vector<1x64xf32>
    %253 = vector.shape_cast %252 : vector<1x64xf32> to vector<1x1x64xf32>
    %cst_92 = arith.constant dense<0.000000e+00> : vector<1xf32>
    %254 = vector.multi_reduction <add>, %253, %cst_92 [1, 2] : vector<1x1x64xf32> to vector<1xf32>
    %255 = vector.shape_cast %254 : vector<1xf32> to vector<1x1x1xf32>
    %256 = vector.extract %255[0, 0, 0] : f32 from vector<1x1x1xf32>
    %257 = math.rsqrt %256 : f32
    %258 = vector.broadcast %247 : vector<1x64xf32> to vector<16x64xf32>
    %259 = arith.mulf %246, %258 : vector<16x64xf32>
    %cst_93 = arith.constant dense<0.000000e+00> : vector<16xf32>
    %260 = vector.multi_reduction <add>, %259, %cst_93 [1] : vector<16x64xf32> to vector<16xf32>
    %261 = vector.shape_cast %260 : vector<16xf32> to vector<16x1xf32>
    %262 = math.absf %261 : vector<16x1xf32>
    %263 = vector.broadcast %257 : f32 to vector<16x1xf32>
    %264 = arith.mulf %262, %263 : vector<16x1xf32>
    %cst_94 = arith.constant dense<0.000000e+00> : vector<1x16xf32>
    %265 = tpu.matmul %247, %246, %cst_94 {dimension_numbers = #tpu.dot_dimension_numbers<[1], [1], [0], [0], [0, 0, 1, 0], [], []>} : vector<1x64xf32>, vector<16x64xf32>, vector<1x16xf32> -> vector<1x16xf32>
    %266 = math.absf %265 : vector<1x16xf32>
    %267 = vector.broadcast %257 : f32 to vector<1x16xf32>
    %268 = arith.mulf %266, %267 : vector<1x16xf32>
    %cst_95 = arith.constant -1.000000e+30 : f32
    %269 = vector.shape_cast %268 : vector<1x16xf32> to vector<1x16xf32>
    %270 = vector.broadcast %269 : vector<1x16xf32> to vector<16x16xf32>
    %271 = vector.broadcast %cst_95 : f32 to vector<16x16xf32>
    %272 = arith.select %2, %270, %271 : vector<16x16xi1>, vector<16x16xf32>
    %cst_96 = arith.constant dense<0xFF800000> : vector<16xf32>
    %273 = vector.multi_reduction <maximumf>, %272, %cst_96 [1] : vector<16x16xf32> to vector<16xf32>
    %274 = vector.shape_cast %273 : vector<16xf32> to vector<16x1xf32>
    %275 = vector.broadcast %274 : vector<16x1xf32> to vector<16x16xf32>
    %276 = arith.cmpf oge, %272, %275 : vector<16x16xf32>
    %cst_97 = arith.constant -5.000000e+29 : f32
    %277 = vector.broadcast %cst_97 : f32 to vector<16x1xf32>
    %278 = arith.cmpf ogt, %274, %277 : vector<16x1xf32>
    %279 = vector.broadcast %278 : vector<16x1xi1> to vector<16x16xi1>
    %280 = arith.andi %276, %279 : vector<16x16xi1>
    %cst_98 = arith.constant -1.000000e+30 : f32
    %281 = vector.broadcast %cst_98 : f32 to vector<16x16xf32>
    %282 = arith.select %280, %281, %272 : vector<16x16xi1>, vector<16x16xf32>
    %cst_99 = arith.constant dense<0xFF800000> : vector<16xf32>
    %283 = vector.multi_reduction <maximumf>, %282, %cst_99 [1] : vector<16x16xf32> to vector<16xf32>
    %284 = vector.shape_cast %283 : vector<16xf32> to vector<16x1xf32>
    %285 = vector.broadcast %284 : vector<16x1xf32> to vector<16x16xf32>
    %286 = arith.cmpf oge, %282, %285 : vector<16x16xf32>
    %cst_100 = arith.constant -5.000000e+29 : f32
    %287 = vector.broadcast %cst_100 : f32 to vector<16x1xf32>
    %288 = arith.cmpf ogt, %284, %287 : vector<16x1xf32>
    %289 = vector.broadcast %288 : vector<16x1xi1> to vector<16x16xi1>
    %290 = arith.andi %286, %289 : vector<16x16xi1>
    %291 = arith.ori %280, %290 : vector<16x16xi1>
    %cst_101 = arith.constant -1.000000e+30 : f32
    %292 = vector.broadcast %cst_101 : f32 to vector<16x16xf32>
    %293 = arith.select %290, %292, %282 : vector<16x16xi1>, vector<16x16xf32>
    %cst_102 = arith.constant dense<0xFF800000> : vector<16xf32>
    %294 = vector.multi_reduction <maximumf>, %293, %cst_102 [1] : vector<16x16xf32> to vector<16xf32>
    %295 = vector.shape_cast %294 : vector<16xf32> to vector<16x1xf32>
    %296 = vector.broadcast %295 : vector<16x1xf32> to vector<16x16xf32>
    %297 = arith.cmpf oge, %293, %296 : vector<16x16xf32>
    %cst_103 = arith.constant -5.000000e+29 : f32
    %298 = vector.broadcast %cst_103 : f32 to vector<16x1xf32>
    %299 = arith.cmpf ogt, %295, %298 : vector<16x1xf32>
    %300 = vector.broadcast %299 : vector<16x1xi1> to vector<16x16xi1>
    %301 = arith.andi %297, %300 : vector<16x16xi1>
    %302 = arith.ori %291, %301 : vector<16x16xi1>
    %cst_104 = arith.constant -1.000000e+30 : f32
    %303 = vector.broadcast %cst_104 : f32 to vector<16x16xf32>
    %304 = arith.select %301, %303, %293 : vector<16x16xi1>, vector<16x16xf32>
    %cst_105 = arith.constant dense<0xFF800000> : vector<16xf32>
    %305 = vector.multi_reduction <maximumf>, %304, %cst_105 [1] : vector<16x16xf32> to vector<16xf32>
    %306 = vector.shape_cast %305 : vector<16xf32> to vector<16x1xf32>
    %307 = vector.broadcast %306 : vector<16x1xf32> to vector<16x16xf32>
    %308 = arith.cmpf oge, %304, %307 : vector<16x16xf32>
    %cst_106 = arith.constant -5.000000e+29 : f32
    %309 = vector.broadcast %cst_106 : f32 to vector<16x1xf32>
    %310 = arith.cmpf ogt, %306, %309 : vector<16x1xf32>
    %311 = vector.broadcast %310 : vector<16x1xi1> to vector<16x16xi1>
    %312 = arith.andi %308, %311 : vector<16x16xi1>
    %313 = arith.ori %302, %312 : vector<16x16xi1>
    %cst_107 = arith.constant 0.000000e+00 : f32
    %314 = vector.broadcast %cst_107 : f32 to vector<16x1xf32>
    %315 = arith.subf %314, %264 : vector<16x1xf32>
    %316 = math.exp %315 : vector<16x1xf32>
    %cst_108 = arith.constant 1.000000e+00 : f32
    %317 = vector.broadcast %cst_108 : f32 to vector<16x1xf32>
    %318 = arith.addf %317, %316 : vector<16x1xf32>
    %319 = tpu.reciprocal %318 {approx = true} : vector<16x1xf32> -> vector<16x1xf32>
    %320 = vector.broadcast %319 : vector<16x1xf32> to vector<16x64xf32>
    %321 = arith.mulf %320, %246 : vector<16x64xf32>
    %cst_109 = arith.constant dense<0.000000e+00> : vector<16x16xf32>
    %322 = tpu.matmul %321, %248, %cst_109 {dimension_numbers = #tpu.dot_dimension_numbers<[1], [0], [0], [1], [0, 0, 1, 1], [], []>} : vector<16x64xf32>, vector<64x16xf32>, vector<16x16xf32> -> vector<16x16xf32>
    %cst_110 = arith.constant dense<0.000000e+00> : vector<4x16xf32>
    %323 = tpu.matmul %249, %322, %cst_110 {dimension_numbers = #tpu.dot_dimension_numbers<[1], [1], [0], [0], [0, 0, 1, 0], [], []>} : vector<4x16xf32>, vector<16x16xf32>, vector<4x16xf32> -> vector<4x16xf32>
    %324 = vector.extract_strided_slice %323 {offsets = [0, 0], sizes = [2, 16], strides = [1, 1]} : vector<4x16xf32> to vector<2x16xf32>
    %325 = vector.extract_strided_slice %323 {offsets = [2, 0], sizes = [2, 16], strides = [1, 1]} : vector<4x16xf32> to vector<2x16xf32>
    %326 = vector.shape_cast %325 : vector<2x16xf32> to vector<2x16x1xf32>
    %327 = vector.shape_cast %324 : vector<2x16xf32> to vector<2x1x16xf32>
    %328 = vector.broadcast %326 : vector<2x16x1xf32> to vector<2x16x16xf32>
    %329 = vector.broadcast %327 : vector<2x1x16xf32> to vector<2x16x16xf32>
    %330 = arith.addf %328, %329 : vector<2x16x16xf32>
    %cst_111 = arith.constant 0.000000e+00 : f32
    %331 = vector.broadcast %cst_111 : f32 to vector<2x16x16xf32>
    %332 = arith.cmpf ogt, %330, %331 : vector<2x16x16xf32>
    %cst_112 = arith.constant 2.000000e-01 : f32
    %333 = vector.broadcast %cst_112 : f32 to vector<2x16x16xf32>
    %334 = arith.mulf %333, %330 : vector<2x16x16xf32>
    %335 = arith.select %332, %330, %334 : vector<2x16x16xi1>, vector<2x16x16xf32>
    %336 = vector.shape_cast %313 : vector<16x16xi1> to vector<1x16x16xi1>
    %cst_113 = arith.constant -1.000000e+30 : f32
    %337 = vector.shape_cast %336 : vector<1x16x16xi1> to vector<1x16x16xi1>
    %338 = vector.broadcast %337 : vector<1x16x16xi1> to vector<2x16x16xi1>
    %339 = vector.broadcast %cst_113 : f32 to vector<2x16x16xf32>
    %340 = arith.select %338, %335, %339 : vector<2x16x16xi1>, vector<2x16x16xf32>
    %cst_114 = arith.constant dense<0xFF800000> : vector<2x16xf32>
    %341 = vector.multi_reduction <maximumf>, %340, %cst_114 [2] : vector<2x16x16xf32> to vector<2x16xf32>
    %342 = vector.shape_cast %341 : vector<2x16xf32> to vector<2x16x1xf32>
    %343 = vector.broadcast %342 : vector<2x16x1xf32> to vector<2x16x16xf32>
    %344 = arith.subf %340, %343 : vector<2x16x16xf32>
    %345 = math.exp %344 : vector<2x16x16xf32>
    %cst_115 = arith.constant dense<0.000000e+00> : vector<2x16xf32>
    %346 = vector.multi_reduction <add>, %345, %cst_115 [2] : vector<2x16x16xf32> to vector<2x16xf32>
    %347 = vector.shape_cast %346 : vector<2x16xf32> to vector<2x16x1xf32>
    %cst_116 = arith.constant 1.000000e-30 : f32
    %348 = vector.broadcast %cst_116 : f32 to vector<2x16x1xf32>
    %349 = arith.maximumf %347, %348 : vector<2x16x1xf32>
    %350 = tpu.reciprocal %349 {approx = true} : vector<2x16x1xf32> -> vector<2x16x1xf32>
    %351 = vector.broadcast %350 : vector<2x16x1xf32> to vector<2x16x16xf32>
    %352 = arith.mulf %345, %351 : vector<2x16x16xf32>
    %353 = vector.shape_cast %352 : vector<2x16x16xf32> to vector<32x16xf32>
    %cst_117 = arith.constant dense<0.000000e+00> : vector<32x16xf32>
    %354 = tpu.matmul %353, %322, %cst_117 {dimension_numbers = #tpu.dot_dimension_numbers<[1], [0], [0], [1], [0, 0, 1, 1], [], []>} : vector<32x16xf32>, vector<16x16xf32>, vector<32x16xf32> -> vector<32x16xf32>
    %355 = vector.shape_cast %354 : vector<32x16xf32> to vector<2x16x16xf32>
    %356 = vector.shape_cast %250 : vector<2x16xf32> to vector<2x1x16xf32>
    %357 = vector.broadcast %356 : vector<2x1x16xf32> to vector<2x16x16xf32>
    %358 = arith.mulf %355, %357 : vector<2x16x16xf32>
    %cst_118 = arith.constant dense<0.000000e+00> : vector<16x16xf32>
    %359 = vector.multi_reduction <add>, %358, %cst_118 [0] : vector<2x16x16xf32> to vector<16x16xf32>
    %cst_119 = arith.constant dense<0.000000e+00> : vector<16x8xf32>
    %360 = tpu.matmul %359, %251, %cst_119 {dimension_numbers = #tpu.dot_dimension_numbers<[1], [0], [0], [1], [0, 0, 1, 1], [], []>} : vector<16x16xf32>, vector<16x8xf32>, vector<16x8xf32> -> vector<16x8xf32>
    %c0_120 = arith.constant 0 : index
    %c0_121 = arith.constant 0 : index
    %361 = vector.load %arg16[%c0_120, %c0_121] : memref<16x8xf32, #tpu.memory_space<vmem>>, vector<16x8xf32>
    tpu.vector_store %arg16[%c0_120, %c0_121], %360 {strides = array<i32>} : memref<16x8xf32, #tpu.memory_space<vmem>>, vector<16x8xf32>,
    return
  }
}

</mosaic_0001>

<bundles_post_ra>
// kernel: tpu_custom_call.1
= control target key start
LH: loop header
LB: loop body
LE: loop exit
PB: predicated region body
PF: predicated region fallthrough
CT: control target
= control target key end

     0   :  { %s4171_s0 = inlined_call_operand.hbm [shape: f32[16,16], index: 0, kind: input, shape index: {}]   ;;  %s4172_s1 = inlined_call_operand.hbm [shape: f32[16,16], index: 1, kind: input, shape index: {}]   ;;  %s4173_s2 = inlined_call_operand.vmem [shape: f32[1,16], index: 2, kind: input, shape index: {}]   ;;  %s4174_s3 = inlined_call_operand.hbm [shape: f32[16,64], index: 3, kind: input, shape index: {}]   ;;  %s4175_s4 = inlined_call_operand.hbm [shape: f32[8,64], index: 4, kind: input, shape index: {}]   ;;  %s4176_s5 = inlined_call_operand.hbm [shape: f32[4,64], index: 5, kind: input, shape index: {}]   ;;  %s4177_s6 = inlined_call_operand.hbm [shape: f32[1,64], index: 6, kind: input, shape index: {}]   ;;  %s4178_s7 = inlined_call_operand.vmem [shape: f32[64,64], index: 7, kind: input, shape index: {}]   ;;  %s4179_s8 = inlined_call_operand.hbm [shape: f32[8,64], index: 8, kind: input, shape index: {}]   ;;  %s4180_s9 = inlined_call_operand.hbm [shape: f32[4,64], index: 9, kind: input, shape index: {}]   ;;  %s4181_s10 = inlined_call_operand.vmem [shape: f32[64,64], index: 10, kind: input, shape index: {}]   ;;  %s4182_s11 = inlined_call_operand.hbm [shape: f32[1,64], index: 11, kind: input, shape index: {}]   ;;  %s4183_s12 = inlined_call_operand.vmem [shape: f32[64,16], index: 12, kind: input, shape index: {}]   ;;  %s4184_s13 = inlined_call_operand.hbm [shape: f32[4,16], index: 13, kind: input, shape index: {}]   ;;  %s4185_s14 = inlined_call_operand.vmem [shape: f32[2,16], index: 14, kind: input, shape index: {}]   ;;  %s4186_s15 = inlined_call_operand.vmem [shape: f32[16,8], index: 15, kind: input, shape index: {}]   ;;  %s4187_s16 = inlined_call_operand.vmem [shape: f32[16,8], index: 16, kind: output, shape index: {}]  }
   0x1   :  { %4197 = sst [smem:[#allocation24_spill]] %s4171_s0 }
   0x2   :  { %21 = vsyncpa [#allocation3], 0 }
   0x3   :  { %22 = vsyncpa [#allocation5], 0 }
   0x4   :  { %23 = vsyncpa [#allocation8], 0 }
   0x5   :  { %24 = vsyncpa [#allocation11], 0 }
   0x6   :  { %25 = vsyncpa [#allocation14], 0 }
   0x7   :  { %26 = vsyncpa [#allocation17], 0  ;;  %s3398_s21 = smov [#allocation4]   ;;  %s3399_s23 = smov [#allocation7]  }
   0x8   :  { %s44_s22 = sshll.u32 %s3398_s21, 4  ;;  %s71_s24 = sshll.u32 %s3399_s23, 4  ;;  %s45_s22 = int_to_ptr.vmem [resolvable:$true] %s44_s22  ;;  %s72_s24 = int_to_ptr.vmem [resolvable:$true] %s71_s24 }
   0x9   :  { %s3166_s27 = scalar_lea.hbm %s4172_s1, 256 }
   0xa   :  { %p3167_p0 = scmp.ne.s32.totalorder %s4172_s1, %s3166_s27  ;;  %p3170_p1 = scmp.lt.u32.totalorder %s3166_s27, %s4172_s1 }
   0xc   :  { %p3172_p2 = pnand %p3170_p1, %p3167_p0 }
   0xe   :  { %3175 = shalt.err (!%p3172_p2)
}
   0xf   :  { %s3176_s17 = scalar_lea.vmem %s45_s22, 256  ;;  %p3181_p4 = scmp.lt.s32.totalorder %s45_s22, %s45_s22 }
  0x10   :  { %p3177_p3 = scmp.ne.s32.totalorder %s45_s22, %s3176_s17  ;;  %p3182_p5 = scmp.lt.s32.totalorder %s3176_s17, %s3176_s17 }
  0x12   :  { %p3183_p6 = por %p3182_p5, %p3181_p4 }
  0x14   :  { %p3184_p7 = pnand %p3183_p6, %p3177_p3 }
  0x16   :  { %3187 = shalt.err (!%p3184_p7)
}
  0x17   :  { %s3400_s18 = smov 128   ;;  %s3401_s19 = smov 8  }
  0x18   :  { %50 = dma.hbm_to_vmem [thread:$0]  %s4172_s1, 256, %s45_s22, [#allocation5], %s3400_s18, %s3400_s18, %s3401_s19  }
  0x19   :  { %s3188_s26 = scalar_lea.hbm %s4175_s4, 128 }
  0x1a   :  { %p3189_p8 = scmp.ne.s32.totalorder %s4175_s4, %s3188_s26  ;;  %p3192_p9 = scmp.lt.u32.totalorder %s3188_s26, %s4175_s4 }
  0x1c   :  { %p3194_p10 = pnand %p3192_p9, %p3189_p8 }
  0x1e   :  { %3197 = shalt.err (!%p3194_p10)
}
  0x1f   :  { %s3198_s0 = scalar_lea.vmem %s72_s24, 128  ;;  %p3203_p12 = scmp.lt.s32.totalorder %s72_s24, %s72_s24 }
  0x20   :  { %p3199_p11 = scmp.ne.s32.totalorder %s72_s24, %s3198_s0  ;;  %p3204_p13 = scmp.lt.s32.totalorder %s3198_s0, %s3198_s0 }
  0x22   :  { %p3205_p0 = por %p3204_p13, %p3203_p12 }
  0x24   :  { %p3206_p1 = pnand %p3205_p0, %p3199_p11 }
  0x26   :  { %3209 = shalt.err (!%p3206_p1)
}
  0x27   :  { %74 = dma.hbm_to_vmem [thread:$0]  %s4175_s4, 128, %s72_s24, [#allocation8]  }
  0x28   :  { %s3402_s17 = smov [#allocation10]   ;;  %s3403_s21 = smov [#allocation13]  }
  0x29   :  { %s91_s20 = sshll.u32 %s3402_s17, 4  ;;  %s113_s23 = sshll.u32 %s3403_s21, 4  ;;  %s92_s20 = int_to_ptr.vmem [resolvable:$true] %s91_s20  ;;  %s114_s23 = int_to_ptr.vmem [resolvable:$true] %s113_s23 }
  0x2a   :  { %s3210_s27 = scalar_lea.hbm %s4177_s6, 16 }
  0x2b   :  { %p3211_p2 = scmp.ne.s32.totalorder %s4177_s6, %s3210_s27  ;;  %p3214_p3 = scmp.lt.u32.totalorder %s3210_s27, %s4177_s6 }
  0x2d   :  { %p3216_p4 = pnand %p3214_p3, %p3211_p2 }
  0x2f   :  { %3219 = shalt.err (!%p3216_p4)
}
  0x30   :  { %s3220_s4 = scalar_lea.vmem %s92_s20, 16  ;;  %s3224_s24 = scalar_lea.vmem %s92_s20, 32 }
  0x31   :  { %p3221_p5 = scmp.ne.s32.totalorder %s92_s20, %s3220_s4  ;;  %p3225_p6 = scmp.lt.s32.totalorder %s92_s20, %s92_s20 }
  0x32   :  { %p3226_p7 = scmp.lt.s32.totalorder %s3224_s24, %s3220_s4 }
  0x34   :  { %p3227_p8 = por %p3226_p7, %p3225_p6 }
  0x36   :  { %p3228_p9 = pnand %p3227_p8, %p3221_p5 }
  0x38   :  { %3231 = shalt.err (!%p3228_p9)
}
  0x39   :  { %94 = dma.hbm_to_vmem [thread:$0]  %s4177_s6, 16, %s92_s20, [#allocation11]  }
  0x3a   :  { %s3232_s25 = scalar_lea.hbm %s4180_s9, 64 }
  0x3b   :  { %p3233_p10 = scmp.ne.s32.totalorder %s4180_s9, %s3232_s25  ;;  %p3236_p11 = scmp.lt.u32.totalorder %s3232_s25, %s4180_s9 }
  0x3d   :  { %p3238_p12 = pnand %p3236_p11, %p3233_p10 }
  0x3f   :  { %3241 = shalt.err (!%p3238_p12)
}
  0x40   :  { %s3242_s30 = scalar_lea.vmem %s114_s23, 64  ;;  %p3247_p0 = scmp.lt.s32.totalorder %s114_s23, %s114_s23 }
  0x41   :  { %p3243_p13 = scmp.ne.s32.totalorder %s114_s23, %s3242_s30  ;;  %p3248_p1 = scmp.lt.s32.totalorder %s3242_s30, %s3242_s30 }
  0x43   :  { %p3249_p2 = por %p3248_p1, %p3247_p0 }
  0x45   :  { %p3250_p3 = pnand %p3249_p2, %p3243_p13 }
  0x47   :  { %3253 = shalt.err (!%p3250_p3)
}
  0x48   :  { %116 = dma.hbm_to_vmem [thread:$0]  %s4180_s9, 64, %s114_s23, [#allocation14]  }
  0x49   :  { %s3404_s0 = smov [#allocation2]   ;;  %s3405_s24 = smov [#allocation6]  }
  0x4a   :  { %s32_s4 = sshll.u32 %s3404_s0, 4  ;;  %s58_s1 = sshll.u32 %s3405_s24, 4  ;;  %s33_s4 = int_to_ptr.vmem [resolvable:$true] %s32_s4  ;;  %s3551_s1 = int_to_ptr.vmem [resolvable:$true] %s58_s1 }
  0x4b   :  { %s4198_s21 = sld [smem:[#allocation24_spill]] }
  0x51   :  { %s3254_s25 = scalar_lea.hbm %s4198_s21, 256 }
  0x52   :  { %p3255_p4 = scmp.ne.s32.totalorder %s4198_s21, %s3254_s25  ;;  %p3258_p5 = scmp.lt.u32.totalorder %s3254_s25, %s4198_s21 }
  0x54   :  { %p3260_p6 = pnand %p3258_p5, %p3255_p4 }
  0x56   :  { %3263 = shalt.err (!%p3260_p6)
}
  0x57   :  { %s3264_s9 = scalar_lea.vmem %s33_s4, 256  ;;  %p3269_p8 = scmp.lt.s32.totalorder %s33_s4, %s33_s4 }
  0x58   :  { %p3265_p7 = scmp.ne.s32.totalorder %s33_s4, %s3264_s9  ;;  %p3270_p9 = scmp.lt.s32.totalorder %s3264_s9, %s3264_s9 }
  0x5a   :  { %p3271_p10 = por %p3270_p9, %p3269_p8 }
  0x5c   :  { %p3272_p11 = pnand %p3271_p10, %p3265_p7 }
  0x5e   :  { %3275 = shalt.err (!%p3272_p11)
}
  0x5f   :  { %38 = dma.hbm_to_vmem [thread:$0]  %s4198_s21, 256, %s33_s4, [#allocation3], %s3400_s18, %s3400_s18, %s3401_s19  }
  0x60   :  { %s3276_s0 = scalar_lea.hbm %s4174_s3, 256 }
  0x61   :  { %p3277_p12 = scmp.ne.s32.totalorder %s4174_s3, %s3276_s0  ;;  %p3280_p13 = scmp.lt.u32.totalorder %s3276_s0, %s4174_s3 }
  0x63   :  { %p3282_p0 = pnand %p3280_p13, %p3277_p12 }
  0x65   :  { %3285 = shalt.err (!%p3282_p0)
}
  0x66   :  { %s3286_s26 = scalar_lea.vmem %s3551_s1, 256  ;;  %p3291_p2 = scmp.lt.s32.totalorder %s3551_s1, %s3551_s1 }
  0x67   :  { %p3287_p1 = scmp.ne.s32.totalorder %s3551_s1, %s3286_s26  ;;  %p3292_p3 = scmp.lt.s32.totalorder %s3286_s26, %s3286_s26 }
  0x69   :  { %p3293_p4 = por %p3292_p3, %p3291_p2 }
  0x6b   :  { %p3294_p5 = pnand %p3293_p4, %p3287_p1 }
  0x6d   :  { %3297 = shalt.err (!%p3294_p5)
}
  0x6e   :  { %64 = dma.hbm_to_vmem [thread:$0]  %s4174_s3, 256, %s3551_s1, [#allocation5], %s3400_s18, %s3400_s18, %s3401_s19  }
  0x6f   :  { %s3406_s27 = smov [#allocation9]   ;;  %s3407_s29 = smov [#allocation12]  }
  0x70   :  { %s81_s28 = sshll.u32 %s3406_s27, 4  ;;  %s103_s9 = sshll.u32 %s3407_s29, 4  ;;  %s82_s28 = int_to_ptr.vmem [resolvable:$true] %s81_s28  ;;  %s104_s9 = int_to_ptr.vmem [resolvable:$true] %s103_s9 }
  0x71   :  { %s3298_s6 = scalar_lea.hbm %s4176_s5, 64 }
  0x72   :  { %p3299_p6 = scmp.ne.s32.totalorder %s4176_s5, %s3298_s6  ;;  %p3302_p7 = scmp.lt.u32.totalorder %s3298_s6, %s4176_s5 }
  0x74   :  { %p3304_p8 = pnand %p3302_p7, %p3299_p6 }
  0x76   :  { %3307 = shalt.err (!%p3304_p8)
}
  0x77   :  { %s3308_s3 = scalar_lea.vmem %s82_s28, 64  ;;  %p3313_p10 = scmp.lt.s32.totalorder %s82_s28, %s82_s28 }
  0x78   :  { %p3309_p9 = scmp.ne.s32.totalorder %s82_s28, %s3308_s3  ;;  %p3314_p11 = scmp.lt.s32.totalorder %s3308_s3, %s3308_s3 }
  0x7a   :  { %p3315_p12 = por %p3314_p11, %p3313_p10 }
  0x7c   :  { %p3316_p13 = pnand %p3315_p12, %p3309_p9 }
  0x7e   :  { %3319 = shalt.err (!%p3316_p13)
}
  0x7f   :  { %84 = dma.hbm_to_vmem [thread:$0]  %s4176_s5, 64, %s82_s28, [#allocation8]  }
  0x80   :  { %s3320_s25 = scalar_lea.hbm %s4179_s8, 128 }
  0x81   :  { %p3321_p0 = scmp.ne.s32.totalorder %s4179_s8, %s3320_s25  ;;  %p3324_p1 = scmp.lt.u32.totalorder %s3320_s25, %s4179_s8 }
  0x83   :  { %p3326_p2 = pnand %p3324_p1, %p3321_p0 }
  0x85   :  { %3329 = shalt.err (!%p3326_p2)
}
  0x86   :  { %s3330_s29 = scalar_lea.vmem %s104_s9, 128  ;;  %p3335_p4 = scmp.lt.s32.totalorder %s104_s9, %s104_s9 }
  0x87   :  { %p3331_p3 = scmp.ne.s32.totalorder %s104_s9, %s3330_s29  ;;  %p3336_p5 = scmp.lt.s32.totalorder %s3330_s29, %s3330_s29 }
  0x89   :  { %p3337_p6 = por %p3336_p5, %p3335_p4 }
  0x8b   :  { %p3338_p7 = pnand %p3337_p6, %p3331_p3 }
  0x8d   :  { %3341 = shalt.err (!%p3338_p7)
}
  0x8e   :  { %106 = dma.hbm_to_vmem [thread:$0]  %s4179_s8, 128, %s104_s9, [#allocation11]  }
  0x8f   :  { %s3408_s23 = smov [#allocation15]   ;;  %s3409_s6 = smov [#allocation16]  }
  0x90   :  { %s125_s30 = sshll.u32 %s3408_s23, 4  ;;  %s137_s20 = sshll.u32 %s3409_s6, 4  ;;  %s126_s30 = int_to_ptr.vmem [resolvable:$true] %s125_s30  ;;  %s138_s20 = int_to_ptr.vmem [resolvable:$true] %s137_s20 }
  0x91   :  { %s3342_s22 = scalar_lea.hbm %s4182_s11, 16 }
  0x92   :  { %p3343_p8 = scmp.ne.s32.totalorder %s4182_s11, %s3342_s22  ;;  %p3346_p9 = scmp.lt.u32.totalorder %s3342_s22, %s4182_s11 }
  0x94   :  { %p3348_p10 = pnand %p3346_p9, %p3343_p8 }
  0x96   :  { %3351 = shalt.err (!%p3348_p10)
}
  0x97   :  { %s3352_s8 = scalar_lea.vmem %s126_s30, 16  ;;  %s3356_s9 = scalar_lea.vmem %s126_s30, 32 }
  0x98   :  { %p3353_p11 = scmp.ne.s32.totalorder %s126_s30, %s3352_s8  ;;  %p3357_p12 = scmp.lt.s32.totalorder %s126_s30, %s126_s30 }
  0x99   :  { %p3358_p13 = scmp.lt.s32.totalorder %s3356_s9, %s3352_s8 }
  0x9b   :  { %p3359_p0 = por %p3358_p13, %p3357_p12 }
  0x9d   :  { %p3360_p1 = pnand %p3359_p0, %p3353_p11 }
  0x9f   :  { %3363 = shalt.err (!%p3360_p1)
}
  0xa0   :  { %128 = dma.hbm_to_vmem [thread:$0]  %s4182_s11, 16, %s126_s30, [#allocation14]  }
  0xa1   :  { %s3364_s21 = scalar_lea.hbm %s4184_s13, 64 }
  0xa2   :  { %p3365_p2 = scmp.ne.s32.totalorder %s4184_s13, %s3364_s21  ;;  %p3368_p3 = scmp.lt.u32.totalorder %s3364_s21, %s4184_s13 }
  0xa4   :  { %p3370_p4 = pnand %p3368_p3, %p3365_p2 }
  0xa6   :  { %3373 = shalt.err (!%p3370_p4)
}
  0xa7   :  { %s3374_s23 = scalar_lea.vmem %s138_s20, 64  ;;  %p3379_p6 = scmp.lt.s32.totalorder %s138_s20, %s138_s20 }
  0xa8   :  { %p3375_p5 = scmp.ne.s32.totalorder %s138_s20, %s3374_s23  ;;  %p3380_p7 = scmp.lt.s32.totalorder %s3374_s23, %s3374_s23 }
  0xaa   :  { %p3381_p8 = por %p3380_p7, %p3379_p6 }
  0xac   :  { %p3382_p9 = pnand %p3381_p8, %p3375_p5 }
  0xae   :  { %3385 = shalt.err (!%p3382_p9)
}
  0xaf   :  { %140 = dma.hbm_to_vmem [thread:$0]  %s4184_s13, 64, %s138_s20, [#allocation17]  }
  0xb0   :  { %3386 = dma.done.wait [#allocation3], 256  }
  0xb1   :  { %3387 = vsyncadd [#allocation3], 4294967040 }
  0xb2   :  { %3388 = dma.done.wait [#allocation5], 512  }
  0xb3   :  { %3389 = vsyncadd [#allocation5], 4294966784 }
  0xb4   :  { %3390 = dma.done.wait [#allocation8], 192  }
  0xb5   :  { %3391 = vsyncadd [#allocation8], 4294967104 }
  0xb6   :  { %3392 = dma.done.wait [#allocation11], 144  }
  0xb7   :  { %3393 = vsyncadd [#allocation11], 4294967152 }
  0xb8   :  { %3394 = dma.done.wait [#allocation14], 80  }
  0xb9   :  { %3395 = vsyncadd [#allocation14], 4294967216 }
  0xba   :  { %3396 = dma.done.wait [#allocation17], 64  }
  0xbb   :  { %3397 = vsyncadd [#allocation17], 4294967232  ;;  %v3410_v0 = vmov 0.0|0.0   ;;  %v202_v1 = vlaneseq  ;;  %vm4191_vm0 = vmmov 0   ;;  %v3412_v2 = vmov 0.0   ;;  %v3653_v7 = vld [vmem:[#allocation2] sm:$0xff] }
  0xbc   :  { %2927 = vmatprep.subr.bf16.mxu0 %v3410_v0  ;;  %2776 = vmatprep.mubr.msk.f32.mxu0 %vm4191_vm0, %v3412_v2  ;;  %vm4195_vm1 = vcmask 130048   ;;  %v4199_v5 = vmov 0  ;;  %v181_v6 = vld [vmem:[%s4173_s2] sm:$0x1]  ;;  %vm187_vm3 = vcmask 122880   ;;  %v3655_v8 = vld [vmem:[#allocation2 + $0x8] sm:$0xff] }
  0xbd   :  { %v3639_v3 = vshrl.u32 %v202_v1, 7  ;;  %vm3646_vm2 = vmpackc.low %vm4195_vm1, %vm4195_vm1  ;;  %v186_v9 = vmul.f32 %v181_v6, %v181_v6  ;;  %v2928_v10 = vpack.c.bf16 %v3655_v8, %v3653_v7  ;;  %v182_v24 = vld [vmem:[#allocation6] sm:$0xff]  ;;  %v183_v25 = vld [vmem:[#allocation6 + $0x8] sm:$0xff]  ;;  %vm4193_vm12 = vcmask 523264  }
  0xbe   :  { %v4200_v5 = vsel %vm3646_vm2, 4294967295, %v4199_v5  ;;  %v2931_v26 = vpack.c.bf16 %v183_v25, %v182_v24  ;;  %v3668_v36 = vld [vmem:[#allocation4 + $0x8] sm:$0xff]  ;;  %v3670_v38 = vld [vmem:[#allocation4] sm:$0xff]  ;;  %vm3703_vm13 = vmpackc.low %vm4193_vm12, %vm4193_vm12 }
  0xbf   :  { %v3642_v4 = vsub.s32 0, %v3639_v3  ;;  %v188_v12 = vsel %vm187_vm3, %v186_v9, 0.0  ;;  %2930 = vmatpush3.bf16.xpose.msk.msra.mxu0 %vm3646_vm2, %v2928_v10  ;;  %vm4190_vm4 = vcmp.gt.f32.partialorder %v3668_v36, 0.5  ;;  %vm4189_vm5 = vcmp.gt.f32.partialorder %v3670_v38, 0.5  ;;  %v1896_v10 = vld [vmem:[%s4183_s12 + $0x8] sm:$0xff] }
  0xc0   :  { %189 = vadd.xlane.f32.xlu0 %v188_v12  ;;  %2932 = vmatprep.subr.bf16.mxu1 %v2931_v26  ;;  %v184_v12 = vld [vmem:[#allocation7] sm:$0xff] }
  0xc1   :  { %v205_v11 = vrot.slane %v181_v6, %v3642_v4  ;;  %2934 = vmatpush3.bf16.msra.mxu1 %v2931_v26 }
  0xc2   :  { %2935 = vmatprep.subr.bf16.mxu1 %v3410_v0 }
  0xc3   :  { %v208_v13 = vmul.f32 %v205_v11, %v3655_v8  ;;  %v207_v14 = vmul.f32 %v205_v11, %v3653_v7 }
  0xc5   :  { %v213_v15 = vsel %vm4195_vm1, %v208_v13, 0.0  ;;  %v210_v16 = vsel %vm4195_vm1, %v207_v14, 0.0 }
  0xc6   :  { %214 = vadd.xlane.f32.xlu1 %v213_v15  ;;  %211 = vadd.xlane.f32.xlu0 %v210_v16 }
  0xc7   :  { %2777 = vmatmul.mubr.msk.f32.vlgmr.msra.gmra.mrb[0].mxu0 %vm4195_vm1, %v181_v6 }
 0x14d   :  { %v190_v17 = vpop.xlane.xlu0 %189 }
 0x14e   :  { %v191_v18 = vrot.slane %v190_v17, 4 }
 0x150   :  { %v192_v19 = vadd.f32 %v191_v18, %v190_v17 }
 0x152   :  { %v193_v20 = vrot.slane %v192_v19, 2 }
 0x153   :  { %v215_v31 = vpop.xlane.xlu1 %214  ;;  %v212_v32 = vpop.xlane.xlu0 %211 }
 0x154   :  { %v194_v21 = vadd.f32 %v193_v20, %v192_v19  ;;  %v217_v34 = vand.u32 2147483647, %v215_v31  ;;  %v216_v35 = vand.u32 2147483647, %v212_v32  ;;  %v569_v31 = vsub.s32 5, %v3639_v3 }
 0x156   :  { %v195_v22 = vrot.slane %v194_v21, 1 }
 0x158   :  { %v196_v23 = vadd.f32 %v195_v22, %v194_v21 }
 0x15a   :  { %3019 = vpush %v196_v23 }
 0x18b   :  { %s3020_s2 = spop %3019 }
 0x18c   :  { %v198_v27 = vstv %s3020_s2 }
 0x18d   :  { %3048 = vrsqrt.f32 %v198_v27 }
 0x197   :  { %v3049_v28 = vpop.eup %3048 }
 0x198   :  { %3021 = vpush %v3049_v28 }
 0x19a   :  { %v295_v29 = vpop.f32.mrb[0].mxu0 }
 0x19b   :  { %v2778_v30 = vpop.f32.mrb[1].mxu0  ;;  %v299_v33 = vand.u32 2147483647, %v295_v29  ;;  %v558_v29 = vsub.s32 4, %v3639_v3 }
 0x19c   :  { %v580_v30 = vsub.s32 6, %v3639_v3 }
 0x1c9   :  { %s3022_s20 = spop %3021 }
 0x1ca   :  { %v218_v37 = vstv %s3022_s20 }
 0x1cb   :  { %v219_v39 = vmul.f32 %v218_v37, %v216_v35  ;;  %v220_v40 = vmul.f32 %v218_v37, %v217_v34  ;;  %v300_v41 = vmul.f32 %v299_v33, %v218_v37 }
 0x1cd   :  { %v383_v42 = vsub.f32 0.0, %v219_v39  ;;  %v384_v43 = vsub.f32 0.0, %v220_v40  ;;  %v304_v44 = vrot.slane %v300_v41, %v3642_v4  ;;  %v591_v39 = vsub.s32 7, %v3639_v3 }
 0x1ce   :  { %v3413_v41 = vmov 1966171168  }
 0x1cf   :  { %v385_v45 = vmul.f32 1.442695, %v383_v42  ;;  %v387_v46 = vmul.f32 1.442695, %v384_v43  ;;  %v306_v47 = vsel %vm4190_vm4, %v304_v44, -1e+30  ;;  %v602_v42 = vunpack.c.l.s4 %v3413_v41 }
 0x1d0   :  { %v310_v48 = vsel %vm4195_vm1, %v306_v47, -inf  ;;  %v305_v49 = vsel %vm4189_vm5, %v304_v44, -1e+30 }
 0x1d1   :  { %3050 = vpow2.f32 %v385_v45  ;;  %311 = vmax.xlane.f32.xlu0 %v310_v48  ;;  %v307_v50 = vsel %vm4195_vm1, %v305_v49, -inf  ;;  %v603_v43 = vunpack.c.0.s8 %v602_v42 }
 0x1d2   :  { %3052 = vpow2.f32 %v387_v46  ;;  %308 = vmax.xlane.f32.xlu1 %v307_v50 }
 0x1d3   :  { %v3758_v44 = vsub.s32 %v603_v43, %v3639_v3 }
 0x1db   :  { %v3051_v51 = vpop.eup %3050 }
 0x1dc   :  { %v3053_v52 = vpop.eup %3052  ;;  %v389_v53 = vadd.f32 1.0, %v3051_v51 }
 0x1dd   :  { %v390_v54 = vadd.f32 1.0, %v3053_v52 }
 0x1de   :  { %3054 = vrcp.f32 %v389_v53 }
 0x1df   :  { %3056 = vrcp.f32 %v390_v54  ;;  %v3414_v54 = vmov 0  }
 0x1e8   :  { %v3055_v55 = vpop.eup %3054 }
 0x1e9   :  { %v3057_v56 = vpop.eup %3056  ;;  %v393_v57 = vmul.f32 %v3055_v55, %v3653_v7 }
 0x1ea   :  { %v394_v58 = vmul.f32 %v3057_v56, %v3655_v8 }
 0x1eb   :  { %2783 = vmatprep.mubr.msk.f32.mxu1 %vm4195_vm1, %v393_v57 }
 0x1ec   :  { %2784 = vmatmul.mubr.msk.f32.vlgmr.msra.gmra.mrb[0].mxu1 %vm4195_vm1, %v394_v58 }
 0x1ed   :  { %2790 = vmatprep.mubr.msk.f32.mxu1 %vm4191_vm0, %v3412_v2 }
 0x25e   :  { %v312_v59 = vpop.xlane.xlu0 %311 }
 0x25f   :  { %vm314_vm6 = vcmp.ge.f32.partialorder %v306_v47, %v312_v59  ;;  %vm316_vm7 = vcmp.gt.f32.partialorder %v312_v59, -5e+29  ;;  %v309_v60 = vpop.xlane.xlu1 %308 }
 0x260   :  { %vm3687_vm8 = vmand %vm314_vm6, %vm316_vm7  ;;  %vm313_vm9 = vcmp.ge.f32.partialorder %v305_v49, %v309_v60  ;;  %vm315_vm10 = vcmp.gt.f32.partialorder %v309_v60, -5e+29 }
 0x261   :  { %vm3691_vm11 = vmand %vm313_vm9, %vm315_vm10  ;;  %v324_v63 = vsel %vm3687_vm8, -1e+30, %v306_v47 }
 0x262   :  { %v328_v1 = vsel %vm4195_vm1, %v324_v63, -inf  ;;  %v323_v6 = vsel %vm3691_vm11, -1e+30, %v305_v49 }
 0x263   :  { %329 = vmax.xlane.f32.xlu0 %v328_v1  ;;  %v325_v7 = vsel %vm4195_vm1, %v323_v6, -inf }
 0x264   :  { %326 = vmax.xlane.f32.xlu1 %v325_v7 }
 0x2bf   :  { %v2785_v8 = vpop.f32.mrb[0].mxu1 }
 0x2c0   :  { %v467_v9 = vpop.f32.mrb[1].mxu1 }
 0x2c1   :  { %v2936_v11 = vpack.c.bf16 %v2785_v8, %v467_v9 }
 0x2c3   :  { %2938 = vmatpush3.bf16.xpose.msk.msra.mxu1 %vm3703_vm13, %v2936_v11  ;;  %2940 = vmatprep.subr.bf16.mxu0 %v2936_v11 }
 0x2c4   :  { %2942 = vmatpush3.bf16.msra.mxu0 %v2936_v11  ;;  %2943 = vmatprep.subr.bf16.mxu1 %v3410_v0 }
 0x2ca   :  { %2791 = vmatmul.mubr.msk.f32.vlgmr.msra.gmra.mrb[2].mxu1 %vm4193_vm12, %v184_v12 }
 0x2cb   :  { %2813 = vmatprep.mubr.msk.f32.mxu1 %vm4191_vm0, %v3412_v2 }
 0x2f0   :  { %v330_v13 = vpop.xlane.xlu0 %329 }
 0x2f1   :  { %vm332_vm14 = vcmp.ge.f32.partialorder %v324_v63, %v330_v13  ;;  %vm334_vm15 = vcmp.gt.f32.partialorder %v330_v13, -5e+29  ;;  %v327_v14 = vpop.xlane.xlu1 %326 }
 0x2f2   :  { %vm3713_vm3 = vmand %vm332_vm14, %vm334_vm15  ;;  %vm331_vm6 = vcmp.ge.f32.partialorder %v323_v6, %v327_v14  ;;  %vm333_vm7 = vcmp.gt.f32.partialorder %v327_v14, -5e+29 }
 0x2f3   :  { %v344_v16 = vsel %vm3713_vm3, -1e+30, %v324_v63  ;;  %vm3719_vm9 = vmand %vm331_vm6, %vm333_vm7 }
 0x2f4   :  { %v348_v18 = vsel %vm4195_vm1, %v344_v16, -inf  ;;  %v343_v19 = vsel %vm3719_vm9, -1e+30, %v323_v6  ;;  %vm342_vm10 = vmor %vm3687_vm8, %vm3713_vm3 }
 0x2f5   :  { %349 = vmax.xlane.f32.xlu0 %v348_v18  ;;  %v345_v20 = vsel %vm4195_vm1, %v343_v19, -inf  ;;  %vm341_vm14 = vmor %vm3691_vm11, %vm3719_vm9 }
 0x2f6   :  { %346 = vmax.xlane.f32.xlu1 %v345_v20 }
 0x382   :  { %v350_v21 = vpop.xlane.xlu0 %349 }
 0x383   :  { %vm352_vm15 = vcmp.ge.f32.partialorder %v344_v16, %v350_v21  ;;  %vm354_vm6 = vcmp.gt.f32.partialorder %v350_v21, -5e+29  ;;  %v347_v22 = vpop.xlane.xlu1 %346 }
 0x384   :  { %vm360_vm7 = vmand %vm352_vm15, %vm354_vm6  ;;  %vm351_vm5 = vcmp.ge.f32.partialorder %v343_v19, %v347_v22  ;;  %vm353_vm4 = vcmp.gt.f32.partialorder %v347_v22, -5e+29 }
 0x385   :  { %v364_v23 = vsel %vm360_vm7, -1e+30, %v344_v16  ;;  %vm3735_vm0 = vmor %vm342_vm10, %vm360_vm7 }
 0x386   :  { %v368_v25 = vsel %vm4195_vm1, %v364_v23, -inf  ;;  %vm359_vm8 = vmand %vm351_vm5, %vm353_vm4 }
 0x387   :  { %369 = vmax.xlane.f32.xlu0 %v368_v25  ;;  %v363_v26 = vsel %vm359_vm8, -1e+30, %v343_v19  ;;  %vm3740_vm3 = vmor %vm341_vm14, %vm359_vm8 }
 0x388   :  { %v365_v28 = vsel %vm4195_vm1, %v363_v26, -inf }
 0x389   :  { %366 = vmax.xlane.f32.xlu1 %v365_v28 }
 0x39d   :  { %v552_v32 = vpop.f32.mrb[2].mxu1 }
 0x39e   :  { %v559_v33 = vrot.slane %v552_v32, %v558_v29  ;;  %v2792_v34 = vpop.f32.mrb[3].mxu1  ;;  %v581_v35 = vrot.slane %v552_v32, %v580_v30  ;;  %v570_v37 = vrot.slane %v552_v32, %v569_v31  ;;  %v592_v40 = vrot.slane %v552_v32, %v591_v39 }
 0x39f   :  { %v607_v45 = vrot.slane %v552_v32, %v3758_v44 }
 0x3a0   :  { %565 = vbcast.lane.b32.xlu0 %v559_v33, 264  ;;  %561 = vbcast.lane.b32.xlu1 %v559_v33, 256 }
 0x3a1   :  { %v615_v46 = vrot.slane %v607_v45, %v3758_v44  ;;  %v608_v47 = vcombine.high %v607_v45, %v607_v45 }
 0x3a3   :  { %v623_v50 = vcombine.high %v615_v46, %v615_v46  ;;  %v622_v51 = vrot.slane %v608_v47, %v3758_v44  ;;  %v628_v52 = vrot.slane %v615_v46, %v3642_v4 }
 0x3a4   :  { %587 = vbcast.lane.b32.xlu0 %v581_v35, 264  ;;  %572 = vbcast.lane.b32.xlu1 %v570_v37, 256 }
 0x3a5   :  { %v636_v58 = vrot.slane %v623_v50, %v3642_v4  ;;  %v624_v59 = vcombine.high %v622_v51, %v622_v51  ;;  %v632_v1 = vrot.slane %v622_v51, %v3642_v4 }
 0x3a7   :  { %v640_v11 = vrot.slane %v624_v59, %v3642_v4 }
 0x3a8   :  { %598 = vbcast.lane.b32.xlu0 %v592_v40, 264  ;;  %576 = vbcast.lane.b32.xlu1 %v570_v37, 264 }
 0x3ac   :  { %583 = vbcast.lane.b32.xlu1 %v581_v35, 256 }
 0x3b0   :  { %594 = vbcast.lane.b32.xlu1 %v592_v40, 256 }
 0x414   :  { %v370_v48 = vpop.xlane.xlu0 %369 }
 0x415   :  { %vm372_vm4 = vcmp.ge.f32.partialorder %v364_v23, %v370_v48  ;;  %vm374_vm5 = vcmp.gt.f32.partialorder %v370_v48, -5e+29 }
 0x416   :  { %vm380_vm11 = vmand %vm372_vm4, %vm374_vm5  ;;  %v367_v49 = vpop.xlane.xlu1 %366 }
 0x417   :  { %vm382_vm9 = vmor %vm3735_vm0, %vm380_vm11  ;;  %vm371_vm10 = vcmp.ge.f32.partialorder %v363_v26, %v367_v49  ;;  %vm373_vm14 = vcmp.gt.f32.partialorder %v367_v49, -5e+29 }
 0x418   :  { %vm379_vm15 = vmand %vm371_vm10, %vm373_vm14  ;;  %v566_v53 = vpop.permute.xlu0 %565  ;;  %v678_v55 = vsel %vm382_vm9, 1, %v3414_v54 }
 0x419   :  { %vm381_vm6 = vmor %vm3740_vm3, %vm379_vm15  ;;  %v646_v56 = vadd.f32 %v628_v52, %v566_v53  ;;  %vm680_vm7 = vcmp.eq.s32.totalorder %v678_v55, 1  ;;  %vm4194_vm15 = vcmask 516096  }
 0x41a   :  { %v562_v57 = vpop.permute.xlu1 %561  ;;  %v677_v60 = vsel %vm381_vm6, 1, %v3414_v54 }
 0x41b   :  { %v662_v61 = vmul.f32 0.2, %v646_v56  ;;  %v645_v62 = vadd.f32 %v628_v52, %v562_v57  ;;  %vm654_vm0 = vcmp.gt.f32.partialorder %v646_v56, 0.0  ;;  %vm679_vm4 = vcmp.eq.s32.totalorder %v677_v60, 1 }
 0x41c   :  { %v588_v63 = vpop.permute.xlu0 %587 }
 0x41d   :  { %v661_v6 = vmul.f32 0.2, %v645_v62  ;;  %v650_v7 = vadd.f32 %v636_v58, %v588_v63  ;;  %v670_v8 = vsel %vm654_vm0, %v646_v56, %v662_v61  ;;  %vm653_vm8 = vcmp.gt.f32.partialorder %v645_v62, 0.0 }
 0x41e   :  { %v573_v9 = vpop.permute.xlu1 %572  ;;  %v682_v12 = vsel %vm680_vm7, %v670_v8, -1e+30 }
 0x41f   :  { %v666_v13 = vmul.f32 0.2, %v650_v7  ;;  %v647_v14 = vadd.f32 %v632_v1, %v573_v9  ;;  %v692_v15 = vsel %vm4195_vm1, %v682_v12, -inf  ;;  %v669_v16 = vsel %vm653_vm8, %v645_v62, %v661_v6 }
 0x420   :  { %v599_v17 = vpop.permute.xlu0 %598  ;;  %693 = vmax.xlane.f32.xlu0 %v692_v15  ;;  %v681_v18 = vsel %vm679_vm4, %v669_v16, -1e+30  ;;  %vm658_vm3 = vcmp.gt.f32.partialorder %v650_v7, 0.0  ;;  %vm4216_vm8 = vcmp.gt.f32.partialorder %v3668_v36, 0.5 }
 0x421   :  { %v663_v19 = vmul.f32 0.2, %v647_v14  ;;  %v652_v20 = vadd.f32 %v640_v11, %v599_v17  ;;  %v689_v21 = vsel %vm4195_vm1, %v681_v18, -inf  ;;  %vm655_vm5 = vcmp.gt.f32.partialorder %v647_v14, 0.0 }
 0x422   :  { %v577_v22 = vpop.permute.xlu1 %576  ;;  %690 = vmax.xlane.f32.xlu1 %v689_v21  ;;  %v674_v23 = vsel %vm658_vm3, %v650_v7, %v666_v13 }
 0x423   :  { %v668_v24 = vmul.f32 0.2, %v652_v20  ;;  %v648_v25 = vadd.f32 %v632_v1, %v577_v22  ;;  %v671_v26 = vsel %vm655_vm5, %v647_v14, %v663_v19  ;;  %v686_v27 = vsel %vm680_vm7, %v674_v23, -1e+30 }
 0x424   :  { %v683_v28 = vsel %vm679_vm4, %v671_v26, -1e+30  ;;  %vm660_vm11 = vcmp.gt.f32.partialorder %v652_v20, 0.0  ;;  %v704_v51 = vsel %vm4195_vm1, %v686_v27, -inf }
 0x425   :  { %v664_v32 = vmul.f32 0.2, %v648_v25  ;;  %v695_v33 = vsel %vm4195_vm1, %v683_v28, -inf  ;;  %vm656_vm9 = vcmp.gt.f32.partialorder %v648_v25, 0.0  ;;  %v676_v34 = vsel %vm660_vm11, %v652_v20, %v668_v24 }
 0x426   :  { %v584_v35 = vpop.permute.xlu1 %583  ;;  %696 = vmax.xlane.f32.xlu0 %v695_v33  ;;  %v688_v37 = vsel %vm680_vm7, %v676_v34, -1e+30 }
 0x427   :  { %v649_v40 = vadd.f32 %v636_v58, %v584_v35  ;;  %v672_v41 = vsel %vm656_vm9, %v648_v25, %v664_v32  ;;  %v710_v56 = vsel %vm4195_vm1, %v688_v37, -inf }
 0x428   :  { %v684_v42 = vsel %vm680_vm7, %v672_v41, -1e+30  ;;  %vm4215_vm7 = vmmov 0  }
 0x429   :  { %v665_v43 = vmul.f32 0.2, %v649_v40  ;;  %v698_v45 = vsel %vm4195_vm1, %v684_v42, -inf  ;;  %vm657_vm10 = vcmp.gt.f32.partialorder %v649_v40, 0.0 }
 0x42a   :  { %v595_v46 = vpop.permute.xlu1 %594  ;;  %699 = vmax.xlane.f32.xlu0 %v698_v45 }
 0x42b   :  { %v651_v47 = vadd.f32 %v640_v11, %v595_v46  ;;  %v673_v48 = vsel %vm657_vm10, %v649_v40, %v665_v43 }
 0x42c   :  { %v685_v49 = vsel %vm679_vm4, %v673_v48, -1e+30 }
 0x42d   :  { %v667_v50 = vmul.f32 0.2, %v651_v47  ;;  %v701_v52 = vsel %vm4195_vm1, %v685_v49, -inf  ;;  %vm659_vm14 = vcmp.gt.f32.partialorder %v651_v47, 0.0 }
 0x42e   :  { %705 = vmax.xlane.f32.xlu0 %v704_v51  ;;  %702 = vmax.xlane.f32.xlu1 %v701_v52 }
 0x42f   :  { %v675_v53 = vsel %vm659_vm14, %v651_v47, %v667_v50  ;;  %v3797_v47 = vld [vmem:[#allocation10] sm:$0x1] }
 0x430   :  { %v687_v55 = vsel %vm679_vm4, %v675_v53, -1e+30  ;;  %v1012_v48 = vmul.f32 %v3797_v47, %v3797_v47  ;;  %vm4217_vm4 = vcmp.gt.f32.partialorder %v3670_v38, 0.5 }
 0x431   :  { %v707_v57 = vsel %vm4195_vm1, %v687_v55, -inf }
 0x432   :  { %711 = vmax.xlane.f32.xlu0 %v710_v56  ;;  %708 = vmax.xlane.f32.xlu1 %v707_v57 }
 0x4ad   :  { %v694_v58 = vpop.xlane.xlu0 %693 }
 0x4ae   :  { %v714_v59 = vsub.f32 %v682_v12, %v694_v58 }
 0x4af   :  { %v691_v61 = vpop.xlane.xlu1 %690 }
 0x4b0   :  { %v723_v62 = vmul.f32 1.442695, %v714_v59  ;;  %v713_v63 = vsub.f32 %v681_v18, %v691_v61 }
 0x4b2   :  { %3058 = vpow2.f32 %v723_v62  ;;  %v721_v1 = vmul.f32 1.442695, %v713_v63 }
 0x4b3   :  { %v697_v6 = vpop.xlane.xlu0 %696 }
 0x4b4   :  { %3060 = vpow2.f32 %v721_v1  ;;  %v715_v7 = vsub.f32 %v683_v28, %v697_v6 }
 0x4b6   :  { %v725_v8 = vmul.f32 1.442695, %v715_v7 }
 0x4b7   :  { %v700_v9 = vpop.xlane.xlu0 %699 }
 0x4b8   :  { %3062 = vpow2.f32 %v725_v8  ;;  %v716_v60 = vsub.f32 %v684_v42, %v700_v9 }
 0x4ba   :  { %v727_v11 = vmul.f32 1.442695, %v716_v60 }
 0x4bb   :  { %v706_v13 = vpop.xlane.xlu0 %705  ;;  %v703_v14 = vpop.xlane.xlu1 %702 }
 0x4bc   :  { %v3059_v15 = vpop.eup %3058  ;;  %3064 = vpow2.f32 %v727_v11  ;;  %v718_v16 = vsub.f32 %v686_v27, %v706_v13  ;;  %v717_v17 = vsub.f32 %v685_v49, %v703_v14  ;;  %v1014_v49 = vsel %vm4194_vm15, %v1012_v48, 0.0 }
 0x4bd   :  { %v740_v12 = vsel %vm4195_vm1, %v3059_v15, 0.0 }
 0x4be   :  { %v3061_v19 = vpop.eup %3060  ;;  %v731_v18 = vmul.f32 1.442695, %v718_v16  ;;  %v729_v20 = vmul.f32 1.442695, %v717_v17  ;;  %741 = vadd.xlane.f32.xlu0 %v740_v12 }
 0x4bf   :  { %v712_v21 = vpop.xlane.xlu0 %711  ;;  %v709_v22 = vpop.xlane.xlu1 %708  ;;  %v737_v23 = vsel %vm4195_vm1, %v3061_v19, 0.0 }
 0x4c0   :  { %3066 = vpow2.f32 %v731_v18  ;;  %v720_v24 = vsub.f32 %v688_v37, %v712_v21  ;;  %v719_v25 = vsub.f32 %v687_v55, %v709_v22  ;;  %738 = vadd.xlane.f32.xlu1 %v737_v23 }
 0x4c1   :  { %3068 = vpow2.f32 %v729_v20 }
 0x4c2   :  { %v3063_v26 = vpop.eup %3062  ;;  %v735_v28 = vmul.f32 1.442695, %v720_v24  ;;  %v733_v32 = vmul.f32 1.442695, %v719_v25 }
 0x4c3   :  { %v743_v27 = vsel %vm4195_vm1, %v3063_v26, 0.0 }
 0x4c4   :  { %3070 = vpow2.f32 %v735_v28  ;;  %744 = vadd.xlane.f32.xlu1 %v743_v27 }
 0x4c5   :  { %3072 = vpow2.f32 %v733_v32 }
 0x4c6   :  { %v3065_v33 = vpop.eup %3064 }
 0x4c7   :  { %v746_v34 = vsel %vm4195_vm1, %v3065_v33, 0.0 }
 0x4c8   :  { %747 = vadd.xlane.f32.xlu0 %v746_v34 }
 0x4ca   :  { %v3067_v35 = vpop.eup %3066 }
 0x4cb   :  { %v3069_v40 = vpop.eup %3068  ;;  %v752_v41 = vsel %vm4195_vm1, %v3067_v35, 0.0 }
 0x4cc   :  { %753 = vadd.xlane.f32.xlu0 %v752_v41  ;;  %v749_v37 = vsel %vm4195_vm1, %v3069_v40, 0.0 }
 0x4cd   :  { %750 = vadd.xlane.f32.xlu1 %v749_v37 }
 0x4ce   :  { %v3071_v42 = vpop.eup %3070 }
 0x4cf   :  { %v3073_v43 = vpop.eup %3072  ;;  %v758_v45 = vsel %vm4195_vm1, %v3071_v42, 0.0 }
 0x4d0   :  { %759 = vadd.xlane.f32.xlu0 %v758_v45  ;;  %v755_v46 = vsel %vm4195_vm1, %v3073_v43, 0.0 }
 0x4d1   :  { %756 = vadd.xlane.f32.xlu1 %v755_v46 }
 0x4d5   :  { %1015 = vadd.xlane.f32.xlu1 %v1014_v49 }
 0x54b   :  { %v742_v50 = vpop.xlane.xlu0 %741 }
 0x54c   :  { %v762_v51 = vmax.f32 %v742_v50, 1e-30 }
 0x54d   :  { %v739_v52 = vpop.xlane.xlu1 %738 }
 0x54e   :  { %3074 = vrcp.f32 %v762_v51  ;;  %v761_v53 = vmax.f32 %v739_v52, 1e-30 }
 0x550   :  { %3076 = vrcp.f32 %v761_v53 }
 0x551   :  { %v745_v55 = vpop.xlane.xlu1 %744 }
 0x552   :  { %v763_v56 = vmax.f32 %v745_v55, 1e-30 }
 0x554   :  { %3078 = vrcp.f32 %v763_v56 }
 0x555   :  { %v748_v57 = vpop.xlane.xlu0 %747 }
 0x556   :  { %v764_v58 = vmax.f32 %v748_v57, 1e-30 }
 0x558   :  { %v3075_v59 = vpop.eup %3074  ;;  %3080 = vrcp.f32 %v764_v58 }
 0x559   :  { %v754_v61 = vpop.xlane.xlu0 %753  ;;  %v778_v6 = vmul.f32 %v3075_v59, %v3059_v15 }
 0x55a   :  { %v3077_v62 = vpop.eup %3076  ;;  %v766_v63 = vmax.f32 %v754_v61, 1e-30  ;;  %v751_v1 = vpop.xlane.xlu1 %750 }
 0x55b   :  { %v765_v7 = vmax.f32 %v751_v1, 1e-30  ;;  %v777_v8 = vmul.f32 %v3077_v62, %v3061_v19 }
 0x55c   :  { %3082 = vrcp.f32 %v766_v63 }
 0x55d   :  { %3084 = vrcp.f32 %v765_v7  ;;  %v760_v9 = vpop.xlane.xlu0 %759  ;;  %2797 = vmatprep.mubr.msk.f32.mxu0 %vm4195_vm1, %v777_v8 }
 0x55e   :  { %v3079_v60 = vpop.eup %3078  ;;  %v768_v11 = vmax.f32 %v760_v9, 1e-30  ;;  %v757_v13 = vpop.xlane.xlu1 %756  ;;  %2798 = vmatmul.mubr.msk.f32.vlgmr.msra.gmra.mrb[2].mxu0 %vm4195_vm1, %v778_v6 }
 0x55f   :  { %v767_v14 = vmax.f32 %v757_v13, 1e-30  ;;  %v779_v16 = vmul.f32 %v3079_v60, %v3063_v26 }
 0x560   :  { %3086 = vrcp.f32 %v768_v11 }
 0x561   :  { %3088 = vrcp.f32 %v767_v14  ;;  %2800 = vmatprep.mubr.msk.f32.mxu0 %vm4195_vm1, %v779_v16 }
 0x562   :  { %v3081_v17 = vpop.eup %3080  ;;  %v1016_v25 = vpop.xlane.xlu1 %1015 }
 0x563   :  { %v780_v15 = vmul.f32 %v3081_v17, %v3065_v33  ;;  %v1017_v26 = vrot.slane %v1016_v25, 4 }
 0x565   :  { %2801 = vmatmul.mubr.msk.f32.gmra.mrb[4].mxu0 %vm4195_vm1, %v780_v15  ;;  %v1018_v28 = vadd.f32 %v1017_v26, %v1016_v25 }
 0x566   :  { %v3083_v12 = vpop.eup %3082 }
 0x567   :  { %v3085_v19 = vpop.eup %3084  ;;  %v782_v18 = vmul.f32 %v3083_v12, %v3067_v35  ;;  %v1019_v32 = vrot.slane %v1018_v28, 2 }
 0x568   :  { %v781_v20 = vmul.f32 %v3085_v19, %v3069_v40  ;;  %v2651_v40 = vld.sshfl [vmem:[#allocation9] sm:$0x33 pattern:$0x75316420] }
 0x569   :  { %v1020_v27 = vadd.f32 %v1019_v32, %v1018_v28  ;;  %v922_v41 = vcombine.high %v2651_v40, %v2651_v40 }
 0x56a   :  { %v3087_v21 = vpop.eup %3086  ;;  %2803 = vmatprep.mubr.msk.f32.mxu0 %vm4195_vm1, %v781_v20 }
 0x56b   :  { %v3089_v22 = vpop.eup %3088  ;;  %2804 = vmatmul.mubr.msk.f32.gmra.mrb[6].mxu0 %vm4195_vm1, %v782_v18  ;;  %v784_v23 = vmul.f32 %v3087_v21, %v3071_v42  ;;  %v1021_v33 = vrot.slane %v1020_v27, 1  ;;  %v929_v42 = vrot.slane %v2651_v40, %v3758_v44  ;;  %v936_v45 = vrot.slane %v922_v41, %v3758_v44 }
 0x56c   :  { %v783_v24 = vmul.f32 %v3089_v22, %v3073_v43 }
 0x56d   :  { %v1022_v34 = vadd.f32 %v1021_v33, %v1020_v27  ;;  %v942_v48 = vrot.slane %v929_v42, %v3642_v4  ;;  %v946_v49 = vrot.slane %v936_v45, %v3642_v4  ;;  %v937_v51 = vcombine.high %v929_v42, %v929_v42 }
 0x56e   :  { %2806 = vmatprep.mubr.msk.f32.mxu0 %vm4195_vm1, %v783_v24  ;;  %v938_v62 = vcombine.high %v936_v45, %v936_v45  ;;  %v1031_v33 = vrot.slane %v3797_v47, %v3642_v4 }
 0x56f   :  { %2807 = vmatmul.mubr.msk.f32.gmra.mrb[8].mxu0 %vm4195_vm1, %v784_v23  ;;  %3023 = vpush %v1022_v34  ;;  %v950_v61 = vrot.slane %v937_v51, %v3642_v4 }
 0x570   :  { %v954_v11 = vrot.slane %v938_v62, %v3642_v4 }
 0x5a0   :  { %s3024_s0 = spop %3023 }
 0x5a1   :  { %v1024_v35 = vstv %s3024_s0 }
 0x5a2   :  { %3090 = vrsqrt.f32 %v1024_v35 }
 0x5ac   :  { %v3091_v37 = vpop.eup %3090 }
 0x5ad   :  { %3025 = vpush %v3091_v37 }
 0x5de   :  { %s3026_s28 = spop %3025 }
 0x631   :  { %v2799_v43 = vpop.f32.mrb[2].mxu0 }
 0x632   :  { %v875_v46 = vpop.f32.mrb[3].mxu0  ;;  %v960_v50 = vmul.f32 %v2799_v43, %v942_v48 }
 0x633   :  { %v959_v52 = vmul.f32 %v942_v48, %v875_v46 }
 0x634   :  { %v974_v58 = vsel %vm4193_vm12, %v960_v50, 0.0  ;;  %v995_v50 = vld [vmem:[%s4178_s7 + $0x8] sm:$0xff] }
 0x635   :  { %v967_v63 = vsel %vm4193_vm12, %v959_v52, 0.0  ;;  %v996_v52 = vld [vmem:[%s4178_s7 + $0x10] sm:$0xff] }
 0x638   :  { %v2802_v53 = vpop.f32.mrb[4].mxu0 }
 0x639   :  { %v962_v55 = vmul.f32 %v2802_v53, %v946_v49  ;;  %v885_v56 = vpop.f32.mrb[5].mxu0 }
 0x63a   :  { %v961_v57 = vmul.f32 %v946_v49, %v885_v56  ;;  %v994_v49 = vld [vmem:[%s4178_s7] sm:$0xff]  ;;  %v999_v56 = vld [vmem:[%s4178_s7 + $0x28] sm:$0xff] }
 0x63b   :  { %v975_v59 = vsel %vm4193_vm12, %v962_v55, 0.0  ;;  %v2947_v51 = vpack.c.bf16 %v995_v50, %v994_v49  ;;  %v998_v55 = vld [vmem:[%s4178_s7 + $0x20] sm:$0xff] }
 0x63c   :  { %v976_v1 = vadd.f32 %v975_v59, %v974_v58  ;;  %v968_v6 = vsel %vm4193_vm12, %v961_v57, 0.0  ;;  %v2955_v57 = vpack.c.bf16 %v999_v56, %v998_v55  ;;  %v1000_v58 = vld [vmem:[%s4178_s7 + $0x30] sm:$0xff]  ;;  %v1001_v59 = vld [vmem:[%s4178_s7 + $0x38] sm:$0xff] }
 0x63d   :  { %v969_v7 = vadd.f32 %v968_v6, %v967_v63  ;;  %2948 = vmatprep.subr.bf16.mxu0 %v2947_v51  ;;  %v1043_v63 = vstv %s3026_s28  ;;  %v1002_v55 = vld [vmem:[#allocation12] sm:$0xff] }
 0x63e   :  { %v2805_v8 = vpop.f32.mrb[6].mxu0  ;;  %2950 = vmatpush3.bf16.msra.mxu0 %v2947_v51 }
 0x63f   :  { %v964_v9 = vmul.f32 %v2805_v8, %v950_v61  ;;  %v895_v60 = vpop.f32.mrb[7].mxu0 }
 0x640   :  { %v963_v13 = vmul.f32 %v950_v61, %v895_v60  ;;  %v2959_v61 = vpack.c.bf16 %v1001_v59, %v1000_v58  ;;  %v1009_v58 = vld [vmem:[%s4181_s10 + $0x28] sm:$0xff] }
 0x641   :  { %v977_v14 = vsel %vm4193_vm12, %v964_v9, 0.0 }
 0x642   :  { %v978_v16 = vadd.f32 %v977_v14, %v976_v1  ;;  %v970_v17 = vsel %vm4193_vm12, %v963_v13, 0.0  ;;  %v2808_v15 = vpop.f32.mrb[8].mxu0 }
 0x643   :  { %v971_v12 = vadd.f32 %v970_v17, %v969_v7  ;;  %v966_v19 = vmul.f32 %v2808_v15, %v954_v11  ;;  %v905_v18 = vpop.f32.mrb[9].mxu0 }
 0x644   :  { %v965_v20 = vmul.f32 %v954_v11, %v905_v18 }
 0x645   :  { %v979_v21 = vsel %vm4193_vm12, %v966_v19, 0.0 }
 0x646   :  { %v980_v22 = vadd.f32 %v979_v21, %v978_v16  ;;  %v972_v23 = vsel %vm4193_vm12, %v965_v20, 0.0 }
 0x647   :  { %v973_v24 = vadd.f32 %v972_v23, %v971_v12 }
 0x648   :  { %v984_v25 = vmin.f32 %v980_v22, 0.0  ;;  %vm982_vm6 = vcmp.gt.f32.partialorder %v980_v22, 0.0 }
 0x649   :  { %v983_v26 = vmin.f32 %v973_v24, 0.0  ;;  %vm981_vm0 = vcmp.gt.f32.partialorder %v973_v24, 0.0 }
 0x64a   :  { %v987_v28 = vmul.f32 1.442695, %v984_v25 }
 0x64b   :  { %v985_v32 = vmul.f32 1.442695, %v983_v26 }
 0x64c   :  { %3092 = vpow2.f32 %v987_v28 }
 0x64d   :  { %3094 = vpow2.f32 %v985_v32 }
 0x656   :  { %v3093_v27 = vpop.eup %3092 }
 0x657   :  { %v3095_v34 = vpop.eup %3094  ;;  %v2653_v35 = vadd.f32 -1.0, %v3093_v27 }
 0x658   :  { %v2652_v40 = vadd.f32 -1.0, %v3095_v34 }
 0x659   :  { %v992_v41 = vsel %vm982_vm6, %v980_v22, %v2653_v35 }
 0x65a   :  { %v991_v37 = vsel %vm981_vm0, %v973_v24, %v2652_v40  ;;  %v1034_v42 = vmul.f32 %v1031_v33, %v992_v41 }
 0x65b   :  { %v2944_v43 = vpack.c.bf16 %v992_v41, %v991_v37  ;;  %v1033_v45 = vmul.f32 %v1031_v33, %v991_v37 }
 0x65c   :  { %v1038_v46 = vsel %vm4193_vm12, %v1034_v42, 0.0 }
 0x65d   :  { %1039 = vadd.xlane.f32.xlu1 %v1038_v46  ;;  %2946 = vmatpush3.bf16.xpose.msk.msra.mxu1 %vm3703_vm13, %v2944_v43  ;;  %v1035_v48 = vsel %vm4193_vm12, %v1033_v45, 0.0  ;;  %v1004_v46 = vld [vmem:[%s4181_s10] sm:$0xff] }
 0x65e   :  { %1036 = vadd.xlane.f32.xlu0 %v1035_v48  ;;  %2963 = vmatprep.subr.bf16.mxu1 %v3410_v0  ;;  %v1005_v48 = vld [vmem:[%s4181_s10 + $0x8] sm:$0xff] }
 0x65f   :  { %v2971_v51 = vpack.c.bf16 %v1005_v48, %v1004_v46 }
 0x664   :  { %2814 = vmatmul.mubr.msk.f32.vlgmr.msra.gmra.mrb[4].mxu1 %vm4193_vm12, %v3797_v47  ;;  %v997_v47 = vld [vmem:[%s4178_s7 + $0x18] sm:$0xff] }
 0x665   :  { %2839 = vmatprep.mubr.msk.f32.mxu1 %vm4215_vm7, %v3412_v2  ;;  %v2951_v53 = vpack.c.bf16 %v997_v47, %v996_v52  ;;  %v1006_v47 = vld [vmem:[%s4181_s10 + $0x10] sm:$0xff] }
 0x667   :  { %2952 = vmatprep.subr.bf16.mxu0 %v2951_v53 }
 0x668   :  { %2954 = vmatpush3.bf16.msra.mxu0 %v2951_v53  ;;  %v1007_v53 = vld [vmem:[%s4181_s10 + $0x18] sm:$0xff] }
 0x669   :  { %2956 = vmatprep.subr.bf16.mxu0 %v2955_v57  ;;  %v2975_v56 = vpack.c.bf16 %v1007_v53, %v1006_v47 }
 0x66c   :  { %2958 = vmatpush3.bf16.msra.mxu0 %v2955_v57  ;;  %v1008_v57 = vld [vmem:[%s4181_s10 + $0x20] sm:$0xff] }
 0x66d   :  { %2960 = vmatprep.subr.bf16.mxu0 %v2959_v61  ;;  %v2979_v59 = vpack.c.bf16 %v1009_v58, %v1008_v57 }
 0x670   :  { %2962 = vmatpush3.bf16.msra.mxu0 %v2959_v61  ;;  %v1010_v61 = vld [vmem:[%s4181_s10 + $0x30] sm:$0xff] }
 0x6ea   :  { %v1040_v62 = vpop.xlane.xlu1 %1039 }
 0x6eb   :  { %v1042_v1 = vand.u32 2147483647, %v1040_v62  ;;  %v1037_v6 = vpop.xlane.xlu0 %1036  ;;  %v1011_v62 = vld [vmem:[%s4181_s10 + $0x38] sm:$0xff] }
 0x6ec   :  { %v1041_v7 = vand.u32 2147483647, %v1037_v6 }
 0x6ed   :  { %v1045_v8 = vmul.f32 %v1043_v63, %v1042_v1 }
 0x6ee   :  { %v1044_v9 = vmul.f32 %v1043_v63, %v1041_v7 }
 0x6ef   :  { %v1209_v60 = vsub.f32 0.0, %v1045_v8 }
 0x6f0   :  { %v1208_v11 = vsub.f32 0.0, %v1044_v9 }
 0x6f1   :  { %v1212_v13 = vmul.f32 1.442695, %v1209_v60 }
 0x6f2   :  { %v1210_v14 = vmul.f32 1.442695, %v1208_v11 }
 0x6f3   :  { %3096 = vpow2.f32 %v1212_v13 }
 0x6f4   :  { %3098 = vpow2.f32 %v1210_v14 }
 0x6fd   :  { %v3097_v16 = vpop.eup %3096 }
 0x6fe   :  { %v3099_v17 = vpop.eup %3098  ;;  %v1215_v15 = vadd.f32 1.0, %v3097_v16 }
 0x6ff   :  { %v1214_v12 = vadd.f32 1.0, %v3099_v17 }
 0x700   :  { %3100 = vrcp.f32 %v1215_v15 }
 0x701   :  { %3102 = vrcp.f32 %v1214_v12 }
 0x70a   :  { %v3101_v19 = vpop.eup %3100 }
 0x70b   :  { %v3103_v18 = vpop.eup %3102  ;;  %v1219_v21 = vmul.f32 %v3101_v19, %v992_v41 }
 0x70c   :  { %v1218_v20 = vmul.f32 %v3103_v18, %v991_v37 }
 0x70e   :  { %2832 = vmatprep.mubr.msk.f32.mxu0 %vm4193_vm12, %v1218_v20 }
 0x70f   :  { %2833 = vmatmul.mubr.msk.f32.vlgmr.msra.gmra.mrb[10].mxu0 %vm4193_vm12, %v1219_v21 }
 0x737   :  { %v1120_v22 = vpop.f32.mrb[4].mxu1 }
 0x738   :  { %v1124_v23 = vand.u32 2147483647, %v1120_v22  ;;  %v2815_v24 = vpop.f32.mrb[5].mxu1 }
 0x73a   :  { %v1125_v25 = vmul.f32 %v1124_v23, %v1043_v63  ;;  %v2983_v63 = vpack.c.bf16 %v1011_v62, %v1010_v61 }
 0x73c   :  { %v1129_v26 = vrot.slane %v1125_v25, %v3642_v4 }
 0x73e   :  { %v1131_v28 = vsel %vm4216_vm8, %v1129_v26, -1e+30  ;;  %v1130_v32 = vsel %vm4217_vm4, %v1129_v26, -1e+30 }
 0x73f   :  { %v1135_v27 = vsel %vm4195_vm1, %v1131_v28, -inf  ;;  %v1132_v33 = vsel %vm4195_vm1, %v1130_v32, -inf }
 0x740   :  { %1136 = vmax.xlane.f32.xlu1 %v1135_v27  ;;  %1133 = vmax.xlane.f32.xlu0 %v1132_v33 }
 0x7cd   :  { %v1134_v34 = vpop.xlane.xlu0 %1133  ;;  %v1137_v35 = vpop.xlane.xlu1 %1136 }
 0x7ce   :  { %vm1138_vm3 = vcmp.ge.f32.partialorder %v1130_v32, %v1134_v34  ;;  %vm1140_vm5 = vcmp.gt.f32.partialorder %v1134_v34, -5e+29  ;;  %vm1139_vm11 = vcmp.ge.f32.partialorder %v1131_v28, %v1137_v35  ;;  %vm1141_vm9 = vcmp.gt.f32.partialorder %v1137_v35, -5e+29 }
 0x7cf   :  { %vm3868_vm10 = vmand %vm1138_vm3, %vm1140_vm5 }
 0x7d0   :  { %vm3872_vm14 = vmand %vm1139_vm11, %vm1141_vm9  ;;  %v1148_v37 = vsel %vm3868_vm10, -1e+30, %v1130_v32 }
 0x7d1   :  { %v1150_v42 = vsel %vm4195_vm1, %v1148_v37, -inf  ;;  %v1149_v43 = vsel %vm3872_vm14, -1e+30, %v1131_v28 }
 0x7d2   :  { %1151 = vmax.xlane.f32.xlu0 %v1150_v42  ;;  %v1153_v45 = vsel %vm4195_vm1, %v1149_v43, -inf }
 0x7d3   :  { %1154 = vmax.xlane.f32.xlu1 %v1153_v45 }
 0x7e2   :  { %v2834_v49 = vpop.f32.mrb[10].mxu0 }
 0x7e3   :  { %v1292_v50 = vpop.f32.mrb[11].mxu0 }
 0x7e4   :  { %v2964_v52 = vpack.c.bf16 %v2834_v49, %v1292_v50 }
 0x7e6   :  { %2966 = vmatpush3.bf16.xpose.msk.msra.mxu1 %vm3703_vm13, %v2964_v52  ;;  %2968 = vmatprep.subr.bf16.mxu0 %v2964_v52 }
 0x7e7   :  { %2970 = vmatpush3.bf16.msra.mxu0 %v2964_v52  ;;  %2972 = vmatprep.subr.bf16.mxu1 %v2971_v51 }
 0x7e8   :  { %2987 = vmatprep.subr.bf16.mxu0 %v3410_v0 }
 0x7ed   :  { %2840 = vmatmul.mubr.msk.f32.vlgmr.msra.gmra.mrb[6].mxu1 %vm4193_vm12, %v1002_v55 }
 0x7ee   :  { %2974 = vmatpush3.bf16.msra.mxu1 %v2971_v51  ;;  %2874 = vmatprep.mubr.msk.f32.mxu1 %vm4193_vm12, %v1218_v20 }
 0x7ef   :  { %2976 = vmatprep.subr.bf16.mxu1 %v2975_v56 }
 0x7f2   :  { %2978 = vmatpush3.bf16.msra.mxu1 %v2975_v56 }
 0x7f3   :  { %2980 = vmatprep.subr.bf16.mxu1 %v2979_v59 }
 0x7f6   :  { %2982 = vmatpush3.bf16.msra.mxu1 %v2979_v59 }
 0x7f7   :  { %2984 = vmatprep.subr.bf16.mxu1 %v2983_v63 }
 0x7fa   :  { %2986 = vmatpush3.bf16.msra.mxu1 %v2983_v63 }
 0x7fd   :  { %2875 = vmatmul.mubr.msk.f32.vlgmr.msra.gmra.mrb[8].mxu1 %vm4193_vm12, %v1219_v21 }
 0x85f   :  { %v1152_v1 = vpop.xlane.xlu0 %1151 }
 0x860   :  { %vm1156_vm6 = vcmp.ge.f32.partialorder %v1148_v37, %v1152_v1  ;;  %vm1158_vm0 = vcmp.gt.f32.partialorder %v1152_v1, -5e+29  ;;  %v1155_v6 = vpop.xlane.xlu1 %1154 }
 0x861   :  { %vm3912_vm8 = vmand %vm1156_vm6, %vm1158_vm0  ;;  %vm1157_vm4 = vcmp.ge.f32.partialorder %v1149_v43, %v1155_v6  ;;  %vm1159_vm3 = vcmp.gt.f32.partialorder %v1155_v6, -5e+29 }
 0x862   :  { %v1168_v8 = vsel %vm3912_vm8, -1e+30, %v1148_v37  ;;  %vm3918_vm5 = vmand %vm1157_vm4, %vm1159_vm3 }
 0x863   :  { %v1170_v60 = vsel %vm4195_vm1, %v1168_v8, -inf  ;;  %v1169_v11 = vsel %vm3918_vm5, -1e+30, %v1149_v43  ;;  %vm1166_vm11 = vmor %vm3868_vm10, %vm3912_vm8 }
 0x864   :  { %1171 = vmax.xlane.f32.xlu0 %v1170_v60  ;;  %v1173_v13 = vsel %vm4195_vm1, %v1169_v11, -inf  ;;  %vm1167_vm9 = vmor %vm3872_vm14, %vm3918_vm5 }
 0x865   :  { %1174 = vmax.xlane.f32.xlu1 %v1173_v13 }
 0x8c0   :  { %v1376_v14 = vpop.f32.mrb[6].mxu1 }
 0x8c1   :  { %v1383_v16 = vrot.slane %v1376_v14, %v558_v29  ;;  %v2841_v17 = vpop.f32.mrb[7].mxu1  ;;  %v1405_v15 = vrot.slane %v1376_v14, %v580_v30  ;;  %v1394_v12 = vrot.slane %v1376_v14, %v569_v31  ;;  %v1416_v25 = vrot.slane %v1376_v14, %v591_v39 }
 0x8c2   :  { %v1431_v28 = vrot.slane %v1376_v14, %v3758_v44 }
 0x8c3   :  { %1385 = vbcast.lane.b32.xlu0 %v1383_v16, 256  ;;  %1389 = vbcast.lane.b32.xlu1 %v1383_v16, 264 }
 0x8c4   :  { %v1432_v27 = vcombine.high %v1431_v28, %v1431_v28  ;;  %v1439_v33 = vrot.slane %v1431_v28, %v3758_v44 }
 0x8c6   :  { %v1446_v40 = vrot.slane %v1432_v27, %v3758_v44  ;;  %v1452_v41 = vrot.slane %v1439_v33, %v3642_v4  ;;  %v1447_v37 = vcombine.high %v1439_v33, %v1439_v33 }
 0x8c7   :  { %1407 = vbcast.lane.b32.xlu0 %v1405_v15, 256  ;;  %1396 = vbcast.lane.b32.xlu1 %v1394_v12, 256 }
 0x8c8   :  { %v1456_v39 = vrot.slane %v1446_v40, %v3642_v4  ;;  %v1460_v46 = vrot.slane %v1447_v37, %v3642_v4  ;;  %v1448_v52 = vcombine.high %v1446_v40, %v1446_v40 }
 0x8ca   :  { %v1464_v61 = vrot.slane %v1448_v52, %v3642_v4 }
 0x8cb   :  { %1400 = vbcast.lane.b32.xlu1 %v1394_v12, 264 }
 0x8cf   :  { %1411 = vbcast.lane.b32.xlu1 %v1405_v15, 264 }
 0x8d0   :  { %v3932_v19 = vpop.f32.mrb[8].mxu1 }
 0x8d1   :  { %v3934_v18 = vpop.f32.mrb[9].mxu1 }
 0x8f1   :  { %v1172_v29 = vpop.xlane.xlu0 %1171 }
 0x8f2   :  { %vm1176_vm6 = vcmp.ge.f32.partialorder %v1168_v8, %v1172_v29  ;;  %vm1178_vm0 = vcmp.gt.f32.partialorder %v1172_v29, -5e+29  ;;  %v1175_v30 = vpop.xlane.xlu1 %1174 }
 0x8f3   :  { %vm1184_vm4 = vmand %vm1176_vm6, %vm1178_vm0  ;;  %vm1177_vm3 = vcmp.ge.f32.partialorder %v1169_v11, %v1175_v30  ;;  %vm1179_vm12 = vcmp.gt.f32.partialorder %v1175_v30, -5e+29 }
 0x8f4   :  { %vm3944_vm15 = vmor %vm1166_vm11, %vm1184_vm4  ;;  %v1188_v20 = vsel %vm1184_vm4, -1e+30, %v1168_v8 }
 0x8f5   :  { %v1190_v21 = vsel %vm4195_vm1, %v1188_v20, -inf  ;;  %vm1185_vm10 = vmand %vm1177_vm3, %vm1179_vm12 }
 0x8f6   :  { %1191 = vmax.xlane.f32.xlu0 %v1190_v21  ;;  %v1189_v22 = vsel %vm1185_vm10, -1e+30, %v1169_v11  ;;  %vm3949_vm8 = vmor %vm1167_vm9, %vm1185_vm10 }
 0x8f7   :  { %v1193_v24 = vsel %vm4195_vm1, %v1189_v22, -inf }
 0x8f8   :  { %1194 = vmax.xlane.f32.xlu1 %v1193_v24 }
 0x909   :  { %1422 = vbcast.lane.b32.xlu1 %v1416_v25, 264 }
 0x90c   :  { %1418 = vbcast.lane.b32.xlu0 %v1416_v25, 256 }
 0x935   :  { %v1390_v26 = vpop.permute.xlu1 %1389  ;;  %v1386_v35 = vpop.permute.xlu0 %1385 }
 0x936   :  { %v1469_v42 = vadd.f32 %v1452_v41, %v1386_v35  ;;  %v1470_v43 = vadd.f32 %v1452_v41, %v1390_v26 }
 0x938   :  { %v1485_v50 = vmul.f32 0.2, %v1469_v42  ;;  %v1486_v47 = vmul.f32 0.2, %v1470_v43  ;;  %vm1477_vm12 = vcmp.gt.f32.partialorder %v1469_v42, 0.0  ;;  %vm1478_vm14 = vcmp.gt.f32.partialorder %v1470_v43, 0.0 }
 0x939   :  { %v1397_v32 = vpop.permute.xlu1 %1396  ;;  %v1408_v48 = vpop.permute.xlu0 %1407 }
 0x93a   :  { %v1471_v49 = vadd.f32 %v1456_v39, %v1397_v32  ;;  %v1473_v53 = vadd.f32 %v1460_v46, %v1408_v48  ;;  %v1493_v62 = vsel %vm1477_vm12, %v1469_v42, %v1485_v50  ;;  %v1494_v63 = vsel %vm1478_vm14, %v1470_v43, %v1486_v47 }
 0x93b   :  { %vm4230_vm14 = vcmask 130048  }
 0x93c   :  { %v1487_v57 = vmul.f32 0.2, %v1471_v49  ;;  %vm1479_vm6 = vcmp.gt.f32.partialorder %v1471_v49, 0.0  ;;  %v1489_v1 = vmul.f32 0.2, %v1473_v53  ;;  %vm1481_vm2 = vcmp.gt.f32.partialorder %v1473_v53, 0.0 }
 0x93d   :  { %v1401_v34 = vpop.permute.xlu1 %1400 }
 0x93e   :  { %v1472_v55 = vadd.f32 %v1456_v39, %v1401_v34  ;;  %v1495_v60 = vsel %vm1479_vm6, %v1471_v49, %v1487_v57  ;;  %v1497_v24 = vsel %vm1481_vm2, %v1473_v53, %v1489_v1 }
 0x940   :  { %v1488_v6 = vmul.f32 0.2, %v1472_v55  ;;  %vm1480_vm12 = vcmp.gt.f32.partialorder %v1472_v55, 0.0 }
 0x941   :  { %v1412_v45 = vpop.permute.xlu1 %1411 }
 0x942   :  { %v1474_v51 = vadd.f32 %v1460_v46, %v1412_v45 }
 0x944   :  { %v1490_v58 = vmul.f32 0.2, %v1474_v51  ;;  %vm1482_vm10 = vcmp.gt.f32.partialorder %v1474_v51, 0.0 }
 0x946   :  { %v1498_v17 = vsel %vm1482_vm10, %v1474_v51, %v1490_v58 }
 0x983   :  { %v1192_v56 = vpop.xlane.xlu0 %1191 }
 0x984   :  { %vm1196_vm5 = vcmp.ge.f32.partialorder %v1188_v20, %v1192_v56  ;;  %vm1198_vm11 = vcmp.gt.f32.partialorder %v1192_v56, -5e+29  ;;  %v1496_v20 = vsel %vm1480_vm12, %v1472_v55, %v1488_v6 }
 0x985   :  { %vm1204_vm9 = vmand %vm1196_vm5, %vm1198_vm11  ;;  %v1195_v59 = vpop.xlane.xlu1 %1194 }
 0x986   :  { %vm1206_vm0 = vmor %vm3944_vm15, %vm1204_vm9  ;;  %vm1197_vm4 = vcmp.ge.f32.partialorder %v1189_v22, %v1195_v59  ;;  %vm1199_vm3 = vcmp.gt.f32.partialorder %v1195_v59, -5e+29 }
 0x987   :  { %v1501_v7 = vsel %vm1206_vm0, 1, %v3414_v54  ;;  %vm1205_vm1 = vmand %vm1197_vm4, %vm1199_vm3  ;;  %v1419_v8 = vpop.permute.xlu0 %1418 }
 0x988   :  { %vm1503_vm5 = vcmp.eq.s32.totalorder %v1501_v7, 1  ;;  %vm1207_vm11 = vmor %vm3949_vm8, %vm1205_vm1  ;;  %v1475_v9 = vadd.f32 %v1464_v61, %v1419_v8 }
 0x989   :  { %v1502_v11 = vsel %vm1207_vm11, 1, %v3414_v54  ;;  %v1423_v13 = vpop.permute.xlu1 %1422  ;;  %v1505_v14 = vsel %vm1503_vm5, %v1493_v62, -1e+30  ;;  %v1507_v16 = vsel %vm1503_vm5, %v1495_v60, -1e+30  ;;  %vm4231_vm8 = vmmov %vm4230_vm14 }
 0x98a   :  { %vm1504_vm15 = vcmp.eq.s32.totalorder %v1502_v11, 1  ;;  %v1491_v15 = vmul.f32 0.2, %v1475_v9  ;;  %v1476_v12 = vadd.f32 %v1464_v61, %v1423_v13  ;;  %v1513_v29 = vsel %vm4230_vm14, %v1505_v14, -inf  ;;  %vm4232_vm6 = vmmov %vm4231_vm8 }
 0x98b   :  { %1514 = vmax.xlane.f32.xlu0 %v1513_v29  ;;  %v1506_v30 = vsel %vm1504_vm15, %v1494_v63, -1e+30  ;;  %v1510_v31 = vsel %vm1504_vm15, %v1498_v17, -1e+30  ;;  %vm1483_vm1 = vcmp.gt.f32.partialorder %v1475_v9, 0.0  ;;  %v1519_v28 = vsel %vm4232_vm6, %v1507_v16, -inf  ;;  %vm4233_vm0 = vmmov %vm4232_vm6 }
 0x98c   :  { %v1492_v21 = vmul.f32 0.2, %v1476_v12  ;;  %v1516_v22 = vsel %vm4231_vm8, %v1506_v30, -inf  ;;  %v1508_v23 = vsel %vm1504_vm15, %v1496_v20, -1e+30  ;;  %vm1484_vm9 = vcmp.gt.f32.partialorder %v1476_v12, 0.0  ;;  %vm4234_vm4 = vmmov %vm4233_vm0 }
 0x98d   :  { %1517 = vmax.xlane.f32.xlu1 %v1516_v22  ;;  %v1509_v25 = vsel %vm1503_vm5, %v1497_v24, -1e+30  ;;  %v1499_v26 = vsel %vm1483_vm1, %v1475_v9, %v1491_v15  ;;  %v1528_v34 = vsel %vm4233_vm0, %v1510_v31, -inf  ;;  %v1522_v35 = vsel %vm4234_vm4, %v1508_v23, -inf  ;;  %vm4235_vm2 = vmmov %vm4233_vm0  ;;  %v3995_v24 = vld [vmem:[#allocation15] sm:$0x1] }
 0x98e   :  { %v1500_v32 = vsel %vm1484_vm9, %v1476_v12, %v1492_v21  ;;  %v1511_v27 = vsel %vm1503_vm5, %v1499_v26, -1e+30  ;;  %vm4236_vm3 = vmmov %vm4233_vm0  ;;  %vm4246_vm6 = vcmask 516096  }
 0x98f   :  { %1520 = vmax.xlane.f32.xlu0 %v1519_v28  ;;  %v1512_v33 = vsel %vm1504_vm15, %v1500_v32, -1e+30  ;;  %v1525_v41 = vsel %vm4236_vm3, %v1509_v25, -inf  ;;  %vm4237_vm10 = vmmov %vm4233_vm0 }
 0x990   :  { %v1534_v40 = vsel %vm4235_vm2, %v1512_v33, -inf  ;;  %v1531_v37 = vsel %vm4237_vm10, %v1511_v27, -inf  ;;  %vm4238_vm5 = vmmov %vm4233_vm0 }
 0x991   :  { %1529 = vmax.xlane.f32.xlu1 %v1528_v34  ;;  %vm4239_vm11 = vmmov %vm4233_vm0 }
 0x992   :  { %vm4240_vm12 = vmmov %vm4233_vm0 }
 0x993   :  { %1523 = vmax.xlane.f32.xlu0 %v1522_v35  ;;  %vm4241_vm15 = vmmov %vm4233_vm0 }
 0x994   :  { %vm4242_vm14 = vmmov %vm4233_vm0 }
 0x995   :  { %1535 = vmax.xlane.f32.xlu1 %v1534_v40  ;;  %vm4243_vm1 = vmmov %vm4233_vm0 }
 0x996   :  { %vm4244_vm8 = vmmov %vm4233_vm0 }
 0x997   :  { %1526 = vmax.xlane.f32.xlu0 %v1525_v41  ;;  %vm4245_vm9 = vmmov %vm4233_vm0 }
 0x998   :  { %vm4247_vm4 = vmmov %vm4233_vm0 }
 0x999   :  { %vm4248_vm2 = vmmov %vm4233_vm0 }
 0x99a   :  { %vm4249_vm3 = vmmov %vm4233_vm0 }
 0x99b   :  { %1532 = vmax.xlane.f32.xlu0 %v1531_v37  ;;  %vm4250_vm10 = vmmov %vm4233_vm0 }
 0xa18   :  { %v1515_v42 = vpop.xlane.xlu0 %1514 }
 0xa19   :  { %v1537_v43 = vsub.f32 %v1505_v14, %v1515_v42 }
 0xa1a   :  { %v1518_v39 = vpop.xlane.xlu1 %1517 }
 0xa1b   :  { %v1545_v45 = vmul.f32 1.442695, %v1537_v43  ;;  %v1538_v46 = vsub.f32 %v1506_v30, %v1518_v39 }
 0xa1c   :  { %v1521_v48 = vpop.xlane.xlu0 %1520 }
 0xa1d   :  { %3104 = vpow2.f32 %v1545_v45  ;;  %v1547_v49 = vmul.f32 1.442695, %v1538_v46  ;;  %v1539_v50 = vsub.f32 %v1507_v16, %v1521_v48 }
 0xa1e   :  { %v1530_v51 = vpop.xlane.xlu1 %1529 }
 0xa1f   :  { %3106 = vpow2.f32 %v1547_v49  ;;  %v1549_v52 = vmul.f32 1.442695, %v1539_v50  ;;  %v1542_v47 = vsub.f32 %v1510_v31, %v1530_v51 }
 0xa20   :  { %v1524_v53 = vpop.xlane.xlu0 %1523 }
 0xa21   :  { %3108 = vpow2.f32 %v1549_v52  ;;  %v1540_v55 = vsub.f32 %v1508_v23, %v1524_v53  ;;  %v1555_v57 = vmul.f32 1.442695, %v1542_v47 }
 0xa22   :  { %v1536_v56 = vpop.xlane.xlu1 %1535 }
 0xa23   :  { %v1551_v58 = vmul.f32 1.442695, %v1540_v55  ;;  %v1544_v59 = vsub.f32 %v1512_v33, %v1536_v56 }
 0xa24   :  { %v1527_v61 = vpop.xlane.xlu0 %1526 }
 0xa25   :  { %3110 = vpow2.f32 %v1551_v58  ;;  %v1541_v62 = vsub.f32 %v1509_v25, %v1527_v61  ;;  %v1559_v1 = vmul.f32 1.442695, %v1544_v59  ;;  %v1907_v25 = vmul.f32 %v3995_v24, %v3995_v24 }
 0xa26   :  { %3112 = vpow2.f32 %v1555_v57 }
 0xa27   :  { %v3105_v63 = vpop.eup %3104  ;;  %v1553_v6 = vmul.f32 1.442695, %v1541_v62  ;;  %v1908_v26 = vsel %vm4246_vm6, %v1907_v25, 0.0 }
 0xa28   :  { %v1533_v7 = vpop.xlane.xlu0 %1532  ;;  %v1561_v8 = vsel %vm4238_vm5, %v3105_v63, 0.0  ;;  %vm4251_vm5 = vmmov %vm4233_vm0 }
 0xa29   :  { %v3107_v9 = vpop.eup %3106  ;;  %3114 = vpow2.f32 %v1553_v6  ;;  %v1543_v60 = vsub.f32 %v1511_v27, %v1533_v7  ;;  %1562 = vadd.xlane.f32.xlu0 %v1561_v8 }
 0xa2a   :  { %v1564_v11 = vsel %vm4239_vm11, %v3107_v9, 0.0  ;;  %3116 = vpow2.f32 %v1559_v1  ;;  %vm4252_vm11 = vmmov %vm4233_vm0 }
 0xa2b   :  { %v3109_v13 = vpop.eup %3108  ;;  %v1557_v14 = vmul.f32 1.442695, %v1543_v60  ;;  %1565 = vadd.xlane.f32.xlu1 %v1564_v11 }
 0xa2c   :  { %v1567_v16 = vsel %vm4240_vm12, %v3109_v13, 0.0  ;;  %vm4253_vm12 = vmmov %vm4233_vm0 }
 0xa2d   :  { %3118 = vpow2.f32 %v1557_v14  ;;  %1568 = vadd.xlane.f32.xlu0 %v1567_v16 }
 0xa2f   :  { %v3111_v17 = vpop.eup %3110 }
 0xa30   :  { %v1570_v15 = vsel %vm4241_vm15, %v3111_v17, 0.0  ;;  %v3113_v12 = vpop.eup %3112  ;;  %vm4254_vm15 = vcmask 523264  }
 0xa31   :  { %1571 = vadd.xlane.f32.xlu1 %v1570_v15  ;;  %v1576_v31 = vsel %vm4243_vm1, %v3113_v12, 0.0  ;;  %v2670_v15 = vld.sshfl [vmem:[#allocation13] sm:$0x33 pattern:$0x75316420] }
 0xa33   :  { %v3115_v29 = vpop.eup %3114 }
 0xa34   :  { %v1573_v30 = vsel %vm4242_vm14, %v3115_v29, 0.0  ;;  %v3117_v20 = vpop.eup %3116  ;;  %vm4255_vm14 = vmmov %vm4254_vm15 }
 0xa35   :  { %1574 = vadd.xlane.f32.xlu0 %v1573_v30  ;;  %1577 = vadd.xlane.f32.xlu1 %v1576_v31  ;;  %v1582_v23 = vsel %vm4245_vm9, %v3117_v20, 0.0  ;;  %v1753_v30 = vrot.slane %v2670_v15, %v3758_v44  ;;  %vm4256_vm1 = vmmov %vm4255_vm14 }
 0xa36   :  { %vm4258_vm9 = vmmov %vm4256_vm1 }
 0xa37   :  { %v3119_v21 = vpop.eup %3118  ;;  %v1761_v25 = vcombine.high %v1753_v30, %v1753_v30  ;;  %vm4259_vm6 = vmmov %vm4256_vm1 }
 0xa38   :  { %v1579_v22 = vsel %vm4244_vm8, %v3119_v21, 0.0  ;;  %vm4257_vm8 = vmmov %vm4256_vm1 }
 0xa39   :  { %1580 = vadd.xlane.f32.xlu0 %v1579_v22  ;;  %1583 = vadd.xlane.f32.xlu1 %v1582_v23 }
 0xa3d   :  { %1909 = vadd.xlane.f32.xlu0 %v1908_v26 }
 0xab6   :  { %v1563_v28 = vpop.xlane.xlu0 %1562 }
 0xab7   :  { %v1585_v32 = vmax.f32 %v1563_v28, 1e-30 }
 0xab8   :  { %v1566_v27 = vpop.xlane.xlu1 %1565 }
 0xab9   :  { %3120 = vrcp.f32 %v1585_v32  ;;  %v1586_v33 = vmax.f32 %v1566_v27, 1e-30 }
 0xaba   :  { %v1569_v34 = vpop.xlane.xlu0 %1568 }
 0xabb   :  { %3122 = vrcp.f32 %v1586_v33  ;;  %v1587_v35 = vmax.f32 %v1569_v34, 1e-30 }
 0xabd   :  { %3124 = vrcp.f32 %v1587_v35  ;;  %v1774_v35 = vrot.slane %v1761_v25, %v3642_v4  ;;  %v1900_v25 = vld [vmem:[%s4183_s12 + $0x28] sm:$0xff] }
 0xabe   :  { %v1572_v40 = vpop.xlane.xlu1 %1571 }
 0xabf   :  { %v1588_v41 = vmax.f32 %v1572_v40, 1e-30 }
 0xac1   :  { %3126 = vrcp.f32 %v1588_v41 }
 0xac2   :  { %v1575_v37 = vpop.xlane.xlu0 %1574  ;;  %v1578_v42 = vpop.xlane.xlu1 %1577 }
 0xac3   :  { %v3121_v43 = vpop.eup %3120  ;;  %v1589_v39 = vmax.f32 %v1575_v37, 1e-30  ;;  %v1590_v45 = vmax.f32 %v1578_v42, 1e-30 }
 0xac4   :  { %v1601_v46 = vmul.f32 %v3121_v43, %v3105_v63 }
 0xac5   :  { %v3123_v48 = vpop.eup %3122  ;;  %3128 = vrcp.f32 %v1589_v39 }
 0xac6   :  { %3130 = vrcp.f32 %v1590_v45  ;;  %2846 = vmatprep.mubr.msk.f32.mxu0 %vm4233_vm0, %v1601_v46  ;;  %v1581_v49 = vpop.xlane.xlu0 %1580  ;;  %v1584_v50 = vpop.xlane.xlu1 %1583  ;;  %v1602_v51 = vmul.f32 %v3123_v48, %v3107_v9  ;;  %vm4260_vm0 = vmmov %vm4256_vm1 }
 0xac7   :  { %v3125_v52 = vpop.eup %3124  ;;  %v1591_v47 = vmax.f32 %v1581_v49, 1e-30  ;;  %v1592_v53 = vmax.f32 %v1584_v50, 1e-30 }
 0xac8   :  { %2847 = vmatmul.mubr.msk.f32.vlgmr.msra.gmra.mrb[12].mxu0 %vm4247_vm4, %v1602_v51  ;;  %v1603_v55 = vmul.f32 %v3125_v52, %v3109_v13  ;;  %vm4261_vm4 = vmmov %vm4260_vm0 }
 0xac9   :  { %3132 = vrcp.f32 %v1591_v47 }
 0xaca   :  { %3134 = vrcp.f32 %v1592_v53  ;;  %2849 = vmatprep.mubr.msk.f32.mxu0 %vm4248_vm2, %v1603_v55  ;;  %v1910_v8 = vpop.xlane.xlu0 %1909 }
 0xacb   :  { %v3127_v56 = vpop.eup %3126  ;;  %v1911_v9 = vrot.slane %v1910_v8, 4 }
 0xacc   :  { %v1604_v57 = vmul.f32 %v3127_v56, %v3111_v17 }
 0xacd   :  { %v1912_v60 = vadd.f32 %v1911_v9, %v1910_v8 }
 0xace   :  { %2850 = vmatmul.mubr.msk.f32.gmra.mrb[14].mxu0 %vm4249_vm3, %v1604_v57 }
 0xacf   :  { %v3129_v58 = vpop.eup %3128  ;;  %v1913_v11 = vrot.slane %v1912_v60, 2 }
 0xad0   :  { %v3131_v59 = vpop.eup %3130  ;;  %v1605_v61 = vmul.f32 %v3129_v58, %v3115_v29 }
 0xad1   :  { %v1606_v62 = vmul.f32 %v3131_v59, %v3113_v12  ;;  %v1914_v13 = vadd.f32 %v1913_v11, %v1912_v60  ;;  %v1746_v12 = vcombine.high %v2670_v15, %v2670_v15 }
 0xad2   :  { %2852 = vmatprep.mubr.msk.f32.mxu0 %vm4250_vm10, %v1605_v61  ;;  %vm4262_vm10 = vmmov %vm4260_vm0 }
 0xad3   :  { %v3133_v63 = vpop.eup %3132  ;;  %2853 = vmatmul.mubr.msk.f32.gmra.mrb[16].mxu0 %vm4251_vm5, %v1606_v62  ;;  %v1915_v14 = vrot.slane %v1914_v13, 1  ;;  %v1760_v31 = vrot.slane %v1746_v12, %v3758_v44  ;;  %vm4263_vm5 = vmmov %vm4260_vm0 }
 0xad4   :  { %v3135_v1 = vpop.eup %3134  ;;  %v1607_v6 = vmul.f32 %v3133_v63, %v3119_v21  ;;  %v1766_v21 = vrot.slane %v1753_v30, %v3642_v4 }
 0xad5   :  { %v1608_v7 = vmul.f32 %v3135_v1, %v3117_v20  ;;  %v1916_v16 = vadd.f32 %v1915_v14, %v1914_v13  ;;  %v1770_v23 = vrot.slane %v1760_v31, %v3642_v4  ;;  %v1762_v40 = vcombine.high %v1760_v31, %v1760_v31 }
 0xad6   :  { %2855 = vmatprep.mubr.msk.f32.mxu0 %vm4252_vm11, %v1607_v6  ;;  %vm4264_vm11 = vmmov %vm4260_vm0 }
 0xad7   :  { %2856 = vmatmul.mubr.msk.f32.gmra.mrb[18].mxu0 %vm4253_vm12, %v1608_v7  ;;  %3027 = vpush %v1916_v16  ;;  %v1778_v50 = vrot.slane %v1762_v40, %v3642_v4  ;;  %v1925_v16 = vrot.slane %v3995_v24, %v3642_v4  ;;  %vm4267_vm12 = vcmp.gt.f32.partialorder %v3668_v36, 0.5 }
 0xad8   :  { %2881 = vmatprep.mubr.msk.f32.mxu0 %vm4215_vm7, %v3412_v2 }
 0xb08   :  { %s3028_s10 = spop %3027 }
 0xb09   :  { %v1918_v17 = vstv %s3028_s10 }
 0xb0a   :  { %3136 = vrsqrt.f32 %v1918_v17 }
 0xb14   :  { %v3137_v29 = vpop.eup %3136 }
 0xb15   :  { %3029 = vpush %v3137_v29 }
 0xb46   :  { %s3030_s2 = spop %3029 }
 0xb9b   :  { %v2848_v20 = vpop.f32.mrb[12].mxu0 }
 0xb9c   :  { %v1699_v22 = vpop.f32.mrb[13].mxu0  ;;  %v1784_v26 = vmul.f32 %v2848_v20, %v1766_v21 }
 0xb9d   :  { %v1783_v28 = vmul.f32 %v1766_v21, %v1699_v22 }
 0xb9e   :  { %v1798_v41 = vsel %vm4254_vm15, %v1784_v26, 0.0  ;;  %vm4268_vm15 = vcmp.gt.f32.partialorder %v3670_v38, 0.5 }
 0xb9f   :  { %v1791_v42 = vsel %vm4256_vm1, %v1783_v28, 0.0  ;;  %v1901_v28 = vld [vmem:[%s4183_s12 + $0x30] sm:$0xff] }
 0xba1   :  { %v2851_v32 = vpop.f32.mrb[14].mxu0 }
 0xba2   :  { %v1786_v27 = vmul.f32 %v2851_v32, %v1770_v23  ;;  %v1709_v33 = vpop.f32.mrb[15].mxu0  ;;  %v1902_v32 = vld [vmem:[%s4183_s12 + $0x38] sm:$0xff] }
 0xba3   :  { %v1785_v34 = vmul.f32 %v1770_v23, %v1709_v33  ;;  %v1897_v23 = vld [vmem:[%s4183_s12 + $0x10] sm:$0xff] }
 0xba4   :  { %v1799_v37 = vsel %vm4255_vm14, %v1786_v27, 0.0  ;;  %v3003_v27 = vpack.c.bf16 %v1902_v32, %v1901_v28  ;;  %vm4269_vm14 = vcmask 130048  }
 0xba5   :  { %v1800_v43 = vadd.f32 %v1799_v37, %v1798_v41  ;;  %v1792_v39 = vsel %vm4257_vm8, %v1785_v34, 0.0  ;;  %v1937_v34 = vstv %s3030_s2  ;;  %vm4270_vm1 = vmmov %vm4269_vm14 }
 0xba6   :  { %v1793_v45 = vadd.f32 %v1792_v39, %v1791_v42  ;;  %v2854_v46 = vpop.f32.mrb[16].mxu0 }
 0xba7   :  { %v1788_v48 = vmul.f32 %v2854_v46, %v1774_v35  ;;  %v1719_v49 = vpop.f32.mrb[17].mxu0 }
 0xba8   :  { %v1787_v51 = vmul.f32 %v1774_v35, %v1719_v49 }
 0xba9   :  { %v1801_v52 = vsel %vm4258_vm9, %v1788_v48, 0.0 }
 0xbaa   :  { %v1802_v47 = vadd.f32 %v1801_v52, %v1800_v43  ;;  %v1794_v53 = vsel %vm4259_vm6, %v1787_v51, 0.0  ;;  %v2857_v55 = vpop.f32.mrb[18].mxu0 }
 0xbab   :  { %v1795_v56 = vadd.f32 %v1794_v53, %v1793_v45  ;;  %v1790_v57 = vmul.f32 %v2857_v55, %v1778_v50  ;;  %v1729_v58 = vpop.f32.mrb[19].mxu0 }
 0xbac   :  { %v1789_v59 = vmul.f32 %v1778_v50, %v1729_v58 }
 0xbad   :  { %v1803_v61 = vsel %vm4260_vm0, %v1790_v57, 0.0 }
 0xbae   :  { %v1804_v62 = vadd.f32 %v1803_v61, %v1802_v47  ;;  %v1796_v63 = vsel %vm4261_vm4, %v1789_v59, 0.0 }
 0xbaf   :  { %v1797_v1 = vadd.f32 %v1796_v63, %v1795_v56 }
 0xbb0   :  { %v1808_v6 = vmin.f32 %v1804_v62, 0.0  ;;  %vm1806_vm2 = vcmp.gt.f32.partialorder %v1804_v62, 0.0 }
 0xbb1   :  { %v1807_v7 = vmin.f32 %v1797_v1, 0.0  ;;  %vm1805_vm3 = vcmp.gt.f32.partialorder %v1797_v1, 0.0 }
 0xbb2   :  { %v1811_v8 = vmul.f32 1.442695, %v1808_v6 }
 0xbb3   :  { %v1809_v9 = vmul.f32 1.442695, %v1807_v7 }
 0xbb4   :  { %3138 = vpow2.f32 %v1811_v8 }
 0xbb5   :  { %3140 = vpow2.f32 %v1809_v9 }
 0xbbe   :  { %v3139_v60 = vpop.eup %3138 }
 0xbbf   :  { %v3141_v11 = vpop.eup %3140  ;;  %v2672_v13 = vadd.f32 -1.0, %v3139_v60 }
 0xbc0   :  { %v2671_v14 = vadd.f32 -1.0, %v3141_v11 }
 0xbc1   :  { %v1816_v17 = vsel %vm1806_vm2, %v1804_v62, %v2672_v13 }
 0xbc2   :  { %v1815_v15 = vsel %vm1805_vm3, %v1797_v1, %v2671_v14  ;;  %v1893_v12 = vadd.f32 %v3932_v19, %v1816_v17  ;;  %v1895_v19 = vld [vmem:[%s4183_s12] sm:$0xff]  ;;  %vm4275_vm3 = vmmov %vm4270_vm1 }
 0xbc3   :  { %v1892_v29 = vadd.f32 %v3934_v18, %v1815_v15  ;;  %v2991_v18 = vpack.c.bf16 %v1896_v10, %v1895_v19  ;;  %v1903_v15 = vld [vmem:[#allocation16] sm:$0xf]  ;;  %v2276_v19 = vsub.s32 2, %v3639_v3 }
 0xbc4   :  { %v1928_v30 = vmul.f32 %v1925_v16, %v1893_v12 }
 0xbc5   :  { %v2988_v31 = vpack.c.bf16 %v1893_v12, %v1892_v29  ;;  %v1927_v20 = vmul.f32 %v1925_v16, %v1892_v29  ;;  %2992 = vmatprep.subr.bf16.mxu1 %v2991_v18 }
 0xbc6   :  { %v1932_v21 = vsel %vm4262_vm10, %v1928_v30, 0.0  ;;  %2994 = vmatpush3.bf16.msra.mxu1 %v2991_v18  ;;  %vm4276_vm10 = vmmov %vm4270_vm1 }
 0xbc7   :  { %1933 = vadd.xlane.f32.xlu0 %v1932_v21  ;;  %2990 = vmatpush3.bf16.xpose.msk.msra.mxu0 %vm3703_vm13, %v2988_v31  ;;  %v1929_v22 = vsel %vm4263_vm5, %v1927_v20, 0.0  ;;  %vm4265_vm13 = vmmov %vm4260_vm0  ;;  %vm4277_vm5 = vnez %v4200_v5 }
 0xbc8   :  { %1930 = vadd.xlane.f32.xlu1 %v1929_v22  ;;  %3007 = vmatprep.subr.bf16.mxu0 %v3410_v0  ;;  %v1898_v0 = vld [vmem:[%s4183_s12 + $0x18] sm:$0xff] }
 0xbce   :  { %2882 = vmatmul.mubr.msk.f32.vlgmr.msra.gmra.mrb[20].mxu0 %vm4264_vm11, %v3995_v24  ;;  %v2995_v24 = vpack.c.bf16 %v1898_v0, %v1897_v23  ;;  %vm4278_vm11 = vmmov %vm4270_vm1 }
 0xbcf   :  { %2907 = vmatprep.mubr.msk.f32.mxu0 %vm4215_vm7, %v3412_v2  ;;  %v1899_v2 = vld [vmem:[%s4183_s12 + $0x20] sm:$0xff]  ;;  %vm4266_vm7 = vmmov %vm4260_vm0 }
 0xbd0   :  { %2996 = vmatprep.subr.bf16.mxu1 %v2995_v24  ;;  %v2999_v26 = vpack.c.bf16 %v1900_v25, %v1899_v2 }
 0xbd1   :  { %2998 = vmatpush3.bf16.msra.mxu1 %v2995_v24 }
 0xbd2   :  { %3000 = vmatprep.subr.bf16.mxu1 %v2999_v26 }
 0xbd5   :  { %3002 = vmatpush3.bf16.msra.mxu1 %v2999_v26 }
 0xbd6   :  { %3004 = vmatprep.subr.bf16.mxu1 %v3003_v27 }
 0xbd9   :  { %3006 = vmatpush3.bf16.msra.mxu1 %v3003_v27 }
 0xc54   :  { %v1934_v33 = vpop.xlane.xlu0 %1933 }
 0xc55   :  { %v1936_v35 = vand.u32 2147483647, %v1934_v33  ;;  %v1931_v40 = vpop.xlane.xlu1 %1930  ;;  %v2287_v33 = vsub.s32 3, %v3639_v3 }
 0xc56   :  { %v1935_v41 = vand.u32 2147483647, %v1931_v40 }
 0xc57   :  { %v1939_v37 = vmul.f32 %v1937_v34, %v1936_v35 }
 0xc58   :  { %v1938_v42 = vmul.f32 %v1937_v34, %v1935_v41 }
 0xc59   :  { %v2103_v43 = vsub.f32 0.0, %v1939_v37 }
 0xc5a   :  { %v2102_v39 = vsub.f32 0.0, %v1938_v42 }
 0xc5b   :  { %v2106_v45 = vmul.f32 1.442695, %v2103_v43 }
 0xc5c   :  { %v2104_v46 = vmul.f32 1.442695, %v2102_v39 }
 0xc5d   :  { %3142 = vpow2.f32 %v2106_v45 }
 0xc5e   :  { %3144 = vpow2.f32 %v2104_v46 }
 0xc67   :  { %v3143_v48 = vpop.eup %3142 }
 0xc68   :  { %v3145_v49 = vpop.eup %3144  ;;  %v2109_v50 = vadd.f32 1.0, %v3143_v48 }
 0xc69   :  { %v2108_v51 = vadd.f32 1.0, %v3145_v49 }
 0xc6a   :  { %3146 = vrcp.f32 %v2109_v50 }
 0xc6b   :  { %3148 = vrcp.f32 %v2108_v51 }
 0xc74   :  { %v3147_v52 = vpop.eup %3146 }
 0xc75   :  { %v3149_v47 = vpop.eup %3148  ;;  %v2113_v55 = vmul.f32 %v3147_v52, %v1893_v12 }
 0xc76   :  { %v2112_v53 = vmul.f32 %v3149_v47, %v1892_v29 }
 0xc78   :  { %2900 = vmatprep.mubr.msk.f32.mxu1 %vm4265_vm13, %v2112_v53 }
 0xc79   :  { %2901 = vmatmul.mubr.msk.f32.vlgmr.msra.gmra.mrb[10].mxu1 %vm4266_vm7, %v2113_v55 }
 0xca1   :  { %v2014_v56 = vpop.f32.mrb[20].mxu0 }
 0xca2   :  { %v2018_v57 = vand.u32 2147483647, %v2014_v56  ;;  %v2883_v58 = vpop.f32.mrb[21].mxu0 }
 0xca4   :  { %v2019_v59 = vmul.f32 %v2018_v57, %v1937_v34 }
 0xca6   :  { %v2023_v61 = vrot.slane %v2019_v59, %v3642_v4 }
 0xca8   :  { %v2025_v62 = vsel %vm4267_vm12, %v2023_v61, -1e+30  ;;  %v2024_v63 = vsel %vm4268_vm15, %v2023_v61, -1e+30 }
 0xca9   :  { %v2029_v1 = vsel %vm4269_vm14, %v2025_v62, -inf  ;;  %v2026_v6 = vsel %vm4270_vm1, %v2024_v63, -inf }
 0xcaa   :  { %2030 = vmax.xlane.f32.xlu0 %v2029_v1  ;;  %2027 = vmax.xlane.f32.xlu1 %v2026_v6 }
 0xd37   :  { %v2031_v7 = vpop.xlane.xlu0 %2030  ;;  %v2028_v8 = vpop.xlane.xlu1 %2027 }
 0xd38   :  { %vm2033_vm8 = vcmp.ge.f32.partialorder %v2025_v62, %v2031_v7  ;;  %vm2035_vm9 = vcmp.gt.f32.partialorder %v2031_v7, -5e+29  ;;  %vm2032_vm6 = vcmp.ge.f32.partialorder %v2024_v63, %v2028_v8  ;;  %vm2034_vm0 = vcmp.gt.f32.partialorder %v2028_v8, -5e+29 }
 0xd39   :  { %vm4070_vm4 = vmand %vm2033_vm8, %vm2035_vm9 }
 0xd3a   :  { %vm4074_vm2 = vmand %vm2032_vm6, %vm2034_vm0  ;;  %v2043_v38 = vsel %vm4070_vm4, -1e+30, %v2025_v62 }
 0xd3b   :  { %v2047_v60 = vsel %vm4275_vm3, %v2043_v38, -inf  ;;  %v2042_v11 = vsel %vm4074_vm2, -1e+30, %v2024_v63  ;;  %vm4283_vm8 = vmmov %vm4275_vm3 }
 0xd3c   :  { %2048 = vmax.xlane.f32.xlu0 %v2047_v60  ;;  %v2044_v13 = vsel %vm4276_vm10, %v2042_v11, -inf  ;;  %vm4284_vm9 = vmmov %vm4275_vm3 }
 0xd3d   :  { %2045 = vmax.xlane.f32.xlu1 %v2044_v13 }
 0xd4c   :  { %v2902_v14 = vpop.f32.mrb[10].mxu1 }
 0xd4d   :  { %v2186_v16 = vpop.f32.mrb[11].mxu1 }
 0xd4e   :  { %v3008_v17 = vpack.c.bf16 %v2902_v14, %v2186_v16 }
 0xd50   :  { %3010 = vmatpush3.bf16.xpose.msk.msra.mxu0 %vm4277_vm5, %v3008_v17 }
 0xd51   :  { %3012 = vmatprep.subr.bf16.mxu0 %v3008_v17 }
 0xd57   :  { %2908 = vmatmul.mubr.msk.f32.vlgmr.msra.gmra.mrb[22].mxu0 %vm4278_vm11, %v1903_v15 }
 0xd58   :  { %3014 = vmatpush3.bf16.msra.mxu0 %v3008_v17 }
 0xdc9   :  { %v2049_v12 = vpop.xlane.xlu0 %2048 }
 0xdca   :  { %vm2051_vm13 = vcmp.ge.f32.partialorder %v2043_v38, %v2049_v12  ;;  %vm2053_vm7 = vcmp.gt.f32.partialorder %v2049_v12, -5e+29  ;;  %v2046_v29 = vpop.xlane.xlu1 %2045 }
 0xdcb   :  { %vm4087_vm12 = vmand %vm2051_vm13, %vm2053_vm7  ;;  %vm2050_vm15 = vcmp.ge.f32.partialorder %v2042_v11, %v2046_v29  ;;  %vm2052_vm14 = vcmp.gt.f32.partialorder %v2046_v29, -5e+29 }
 0xdcc   :  { %v2063_v31 = vsel %vm4087_vm12, -1e+30, %v2043_v38  ;;  %vm4093_vm1 = vmand %vm2050_vm15, %vm2052_vm14 }
 0xdcd   :  { %v2067_v20 = vsel %vm4283_vm8, %v2063_v31, -inf  ;;  %v2062_v21 = vsel %vm4093_vm1, -1e+30, %v2042_v11  ;;  %vm2061_vm6 = vmor %vm4070_vm4, %vm4087_vm12 }
 0xdce   :  { %2068 = vmax.xlane.f32.xlu0 %v2067_v20  ;;  %v2064_v22 = vsel %vm4284_vm9, %v2062_v21, -inf  ;;  %vm2060_vm0 = vmor %vm4074_vm2, %vm4093_vm1 }
 0xdcf   :  { %2065 = vmax.xlane.f32.xlu1 %v2064_v22  ;;  %vm4287_vm15 = vmmov %vm4283_vm8 }
 0xdd0   :  { %vm4290_vm2 = vmmov %vm4283_vm8 }
 0xe2a   :  { %v2270_v10 = vpop.f32.mrb[22].mxu0 }
 0xe2b   :  { %v2277_v18 = vrot.slane %v2270_v10, %v2276_v19  ;;  %v2909_v23 = vpop.f32.mrb[23].mxu0  ;;  %v2288_v34 = vrot.slane %v2270_v10, %v2287_v33  ;;  %v2303_v35 = vrot.slane %v2270_v10, %v3758_v44 }
 0xe2d   :  { %2279 = vbcast.lane.b32.xlu1 %v2277_v18, 256  ;;  %v2311_v40 = vrot.slane %v2303_v35, %v3758_v44  ;;  %v2304_v42 = vcombine.high %v2303_v35, %v2303_v35 }
 0xe2f   :  { %v2322_v37 = vrot.slane %v2311_v40, %v3642_v4  ;;  %v2318_v45 = vrot.slane %v2304_v42, %v3758_v44 }
 0xe31   :  { %v2326_v50 = vrot.slane %v2318_v45, %v3642_v4 }
 0xe5b   :  { %v2069_v0 = vpop.xlane.xlu0 %2068 }
 0xe5c   :  { %vm2071_vm3 = vcmp.ge.f32.partialorder %v2063_v31, %v2069_v0  ;;  %vm2073_vm10 = vcmp.gt.f32.partialorder %v2069_v0, -5e+29  ;;  %v2066_v24 = vpop.xlane.xlu1 %2065 }
 0xe5d   :  { %vm2079_vm5 = vmand %vm2071_vm3, %vm2073_vm10  ;;  %vm2070_vm11 = vcmp.ge.f32.partialorder %v2062_v21, %v2066_v24  ;;  %vm2072_vm13 = vcmp.gt.f32.partialorder %v2066_v24, -5e+29 }
 0xe5e   :  { %v2083_v2 = vsel %vm2079_vm5, -1e+30, %v2063_v31  ;;  %vm4110_vm7 = vmor %vm2061_vm6, %vm2079_vm5 }
 0xe5f   :  { %v2087_v26 = vsel %vm4287_vm15, %v2083_v2, -inf  ;;  %vm2078_vm4 = vmand %vm2070_vm11, %vm2072_vm13 }
 0xe60   :  { %2088 = vmax.xlane.f32.xlu0 %v2087_v26  ;;  %v2082_v28 = vsel %vm2078_vm4, -1e+30, %v2062_v21  ;;  %vm4115_vm12 = vmor %vm2060_vm0, %vm2078_vm4 }
 0xe61   :  { %v2084_v27 = vsel %vm4290_vm2, %v2082_v28, -inf  ;;  %vm4291_vm15 = vmmov %vm4290_vm2 }
 0xe62   :  { %2085 = vmax.xlane.f32.xlu1 %v2084_v27 }
 0xe73   :  { %2290 = vbcast.lane.b32.xlu1 %v2288_v34, 256 }
 0xe76   :  { %2283 = vbcast.lane.b32.xlu0 %v2277_v18, 264 }
 0xe77   :  { %2294 = vbcast.lane.b32.xlu1 %v2288_v34, 264 }
 0xe9f   :  { %v2280_v41 = vpop.permute.xlu1 %2279 }
 0xea0   :  { %v2329_v43 = vadd.f32 %v2322_v37, %v2280_v41 }
 0xea2   :  { %v2337_v46 = vmul.f32 0.2, %v2329_v43  ;;  %vm2333_vm0 = vcmp.gt.f32.partialorder %v2329_v43, 0.0 }
 0xea4   :  { %v2341_v47 = vsel %vm2333_vm0, %v2329_v43, %v2337_v46  ;;  %v1905_v46 = vld [vmem:[%s4186_s15] sm:$0xff] }
 0xeed   :  { %v2089_v39 = vpop.xlane.xlu0 %2088 }
 0xeee   :  { %vm2091_vm14 = vcmp.ge.f32.partialorder %v2083_v2, %v2089_v39  ;;  %vm2093_vm1 = vcmp.gt.f32.partialorder %v2089_v39, -5e+29 }
 0xeef   :  { %vm2099_vm8 = vmand %vm2091_vm14, %vm2093_vm1  ;;  %v2086_v3 = vpop.xlane.xlu1 %2085 }
 0xef0   :  { %vm2090_vm9 = vcmp.ge.f32.partialorder %v2082_v28, %v2086_v3  ;;  %vm2092_vm6 = vcmp.gt.f32.partialorder %v2086_v3, -5e+29  ;;  %vm2101_vm3 = vmor %vm4110_vm7, %vm2099_vm8  ;;  %v1906_v3 = vld [vmem:[%s4186_s15 + $0x8] sm:$0xff] }
 0xef1   :  { %vm2098_vm10 = vmand %vm2090_vm9, %vm2092_vm6  ;;  %v2284_v48 = vpop.permute.xlu0 %2283  ;;  %v2346_v51 = vsel %vm2101_vm3, 1, %v3414_v54 }
 0xef2   :  { %v2330_v49 = vadd.f32 %v2322_v37, %v2284_v48  ;;  %vm2100_vm5 = vmor %vm4115_vm12, %vm2098_vm10  ;;  %vm2348_vm7 = vcmp.eq.s32.totalorder %v2346_v51, 1  ;;  %v3015_v48 = vpack.c.bf16 %v1906_v3, %v1905_v46 }
 0xef3   :  { %v2291_v52 = vpop.permute.xlu1 %2290  ;;  %v2345_v53 = vsel %vm2100_vm5, 1, %v3414_v54  ;;  %vm4292_vm12 = vmmov %vm4290_vm2 }
 0xef4   :  { %v2338_v55 = vmul.f32 0.2, %v2330_v49  ;;  %v2331_v56 = vadd.f32 %v2326_v50, %v2291_v52  ;;  %vm2347_vm11 = vcmp.eq.s32.totalorder %v2345_v53, 1  ;;  %vm2334_vm13 = vcmp.gt.f32.partialorder %v2330_v49, 0.0  ;;  %vm4293_vm14 = vmmov %vm4292_vm12  ;;  %3016 = vmatprep.subr.bf16.mxu1 %v3015_v48 }
 0xef5   :  { %v2349_v57 = vsel %vm2347_vm11, %v2341_v47, -1e+30  ;;  %vm4294_vm1 = vmmov %vm4292_vm12  ;;  %3018 = vmatpush3.bf16.msra.mxu1 %v3015_v48 }
 0xef6   :  { %v2339_v58 = vmul.f32 0.2, %v2331_v56  ;;  %v2353_v59 = vsel %vm4291_vm15, %v2349_v57, -inf  ;;  %v2342_v61 = vsel %vm2334_vm13, %v2330_v49, %v2338_v55  ;;  %vm2335_vm4 = vcmp.gt.f32.partialorder %v2331_v56, 0.0  ;;  %vm4295_vm8 = vmmov %vm4294_vm1 }
 0xef7   :  { %v2295_v62 = vpop.permute.xlu1 %2294  ;;  %2354 = vmax.xlane.f32.xlu1 %v2353_v59  ;;  %v2350_v63 = vsel %vm2348_vm7, %v2342_v61, -1e+30  ;;  %vm4296_vm9 = vmmov %vm4294_vm1  ;;  %v2687_v49 = vld.sshfl [vmem:[%s4185_s14] sm:$0x11 pattern:$0x75316420] }
 0xef8   :  { %v2332_v1 = vadd.f32 %v2326_v50, %v2295_v62  ;;  %v2356_v6 = vsel %vm4292_vm12, %v2350_v63, -inf  ;;  %v2343_v7 = vsel %vm2335_vm4, %v2331_v56, %v2339_v58  ;;  %vm4297_vm6 = vmmov %vm4294_vm1  ;;  %v2506_v50 = vcombine.high %v2687_v49, %v2687_v49 }
 0xef9   :  { %2357 = vmax.xlane.f32.xlu0 %v2356_v6  ;;  %v2351_v54 = vsel %vm2347_vm11, %v2343_v7, -1e+30  ;;  %vm4298_vm0 = vmmov %vm4294_vm1  ;;  %v2513_v51 = vrot.slane %v2687_v49, %v3758_v44 }
 0xefa   :  { %v2340_v8 = vmul.f32 0.2, %v2332_v1  ;;  %vm2336_vm2 = vcmp.gt.f32.partialorder %v2332_v1, 0.0  ;;  %v2359_v9 = vsel %vm4293_vm14, %v2351_v54, -inf  ;;  %vm4299_vm3 = vmmov %vm4298_vm0  ;;  %v2520_v53 = vrot.slane %v2506_v50, %v3758_v44 }
 0xefb   :  { %vm4300_vm10 = vmmov %vm4298_vm0  ;;  %v2524_v55 = vrot.slane %v2513_v51, %v3642_v4  ;;  %vm2622_vm14 = vcmask 64512  }
 0xefc   :  { %v2344_v36 = vsel %vm2336_vm2, %v2332_v1, %v2340_v8  ;;  %vm4301_vm5 = vmmov %vm4298_vm0  ;;  %v2528_v56 = vrot.slane %v2520_v53, %v3642_v4 }
 0xefd   :  { %2360 = vmax.xlane.f32.xlu0 %v2359_v9  ;;  %v2352_v38 = vsel %vm2348_vm7, %v2344_v36, -1e+30  ;;  %vm4302_vm11 = vmmov %vm4298_vm0 }
 0xefe   :  { %v2362_v60 = vsel %vm4294_vm1, %v2352_v38, -inf  ;;  %vm4303_vm13 = vmmov %vm4298_vm0 }
 0xeff   :  { %vm4304_vm7 = vmmov %vm4298_vm0 }
 0xf00   :  { %vm4305_vm15 = vmmov %vm4298_vm0 }
 0xf01   :  { %2363 = vmax.xlane.f32.xlu0 %v2362_v60  ;;  %vm4306_vm4 = vmmov %vm4298_vm0 }
 0xf02   :  { %vm4307_vm12 = vmmov %vm4298_vm0 }
 0xf03   :  { %vm4308_vm2 = vmmov %vm4298_vm0 }
 0xf84   :  { %v2355_v11 = vpop.xlane.xlu1 %2354 }
 0xf85   :  { %v2365_v13 = vsub.f32 %v2349_v57, %v2355_v11 }
 0xf86   :  { %v2358_v14 = vpop.xlane.xlu0 %2357 }
 0xf87   :  { %v2369_v16 = vmul.f32 1.442695, %v2365_v13  ;;  %v2366_v17 = vsub.f32 %v2350_v63, %v2358_v14 }
 0xf89   :  { %3150 = vpow2.f32 %v2369_v16  ;;  %v2371_v15 = vmul.f32 1.442695, %v2366_v17 }
 0xf8a   :  { %v2361_v12 = vpop.xlane.xlu0 %2360 }
 0xf8b   :  { %3152 = vpow2.f32 %v2371_v15  ;;  %v2367_v29 = vsub.f32 %v2351_v54, %v2361_v12 }
 0xf8d   :  { %v2373_v30 = vmul.f32 1.442695, %v2367_v29 }
 0xf8e   :  { %v2364_v31 = vpop.xlane.xlu0 %2363 }
 0xf8f   :  { %3154 = vpow2.f32 %v2373_v30  ;;  %v2368_v5 = vsub.f32 %v2352_v38, %v2364_v31 }
 0xf91   :  { %v2375_v20 = vmul.f32 1.442695, %v2368_v5 }
 0xf93   :  { %v3151_v21 = vpop.eup %3150  ;;  %3156 = vpow2.f32 %v2375_v20 }
 0xf94   :  { %v2377_v22 = vsel %vm4295_vm8, %v3151_v21, 0.0 }
 0xf95   :  { %v3153_v19 = vpop.eup %3152  ;;  %2378 = vadd.xlane.f32.xlu1 %v2377_v22 }
 0xf96   :  { %v2380_v10 = vsel %vm4296_vm9, %v3153_v19, 0.0 }
 0xf97   :  { %2381 = vadd.xlane.f32.xlu0 %v2380_v10 }
 0xf99   :  { %v3155_v18 = vpop.eup %3154 }
 0xf9a   :  { %v2383_v23 = vsel %vm4297_vm6, %v3155_v18, 0.0 }
 0xf9b   :  { %2384 = vadd.xlane.f32.xlu1 %v2383_v23 }
 0xf9d   :  { %v3157_v0 = vpop.eup %3156 }
 0xf9e   :  { %v2386_v24 = vsel %vm4298_vm0, %v3157_v0, 0.0 }
 0xf9f   :  { %2387 = vadd.xlane.f32.xlu0 %v2386_v24 }
0x1022   :  { %v2379_v2 = vpop.xlane.xlu1 %2378 }
0x1023   :  { %v2389_v25 = vmax.f32 %v2379_v2, 1e-30 }
0x1024   :  { %v2382_v26 = vpop.xlane.xlu0 %2381 }
0x1025   :  { %3158 = vrcp.f32 %v2389_v25  ;;  %v2390_v28 = vmax.f32 %v2382_v26, 1e-30 }
0x1027   :  { %3160 = vrcp.f32 %v2390_v28 }
0x1028   :  { %v2385_v32 = vpop.xlane.xlu1 %2384 }
0x1029   :  { %v2391_v27 = vmax.f32 %v2385_v32, 1e-30 }
0x102b   :  { %3162 = vrcp.f32 %v2391_v27 }
0x102c   :  { %v2388_v33 = vpop.xlane.xlu0 %2387 }
0x102d   :  { %v2392_v34 = vmax.f32 %v2388_v33, 1e-30 }
0x102f   :  { %v3159_v35 = vpop.eup %3158  ;;  %3164 = vrcp.f32 %v2392_v34 }
0x1030   :  { %v2397_v40 = vmul.f32 %v3159_v35, %v3151_v21 }
0x1031   :  { %v3161_v41 = vpop.eup %3160 }
0x1032   :  { %2914 = vmatprep.mubr.msk.f32.mxu0 %vm4299_vm3, %v2397_v40  ;;  %v2398_v37 = vmul.f32 %v3161_v41, %v3153_v19 }
0x1034   :  { %2915 = vmatmul.mubr.msk.f32.vlgmr.msra.gmra.mrb[24].mxu0 %vm4300_vm10, %v2398_v37 }
0x1035   :  { %v3163_v42 = vpop.eup %3162 }
0x1036   :  { %v2399_v43 = vmul.f32 %v3163_v42, %v3155_v18 }
0x1038   :  { %2917 = vmatprep.mubr.msk.f32.mxu0 %vm4301_vm5, %v2399_v43 }
0x1039   :  { %v3165_v39 = vpop.eup %3164 }
0x103a   :  { %v2400_v45 = vmul.f32 %v3165_v39, %v3157_v0 }
0x103c   :  { %2918 = vmatmul.mubr.msk.f32.gmra.mrb[26].mxu0 %vm4302_vm11, %v2400_v45 }
0x1107   :  { %v2916_v52 = vpop.f32.mrb[24].mxu0 }
0x1108   :  { %v2479_v47 = vpop.f32.mrb[25].mxu0  ;;  %v2532_v57 = vmul.f32 %v2916_v52, %v2524_v55 }
0x1109   :  { %v2531_v58 = vmul.f32 %v2524_v55, %v2479_v47 }
0x110a   :  { %v2538_v1 = vsel %vm4303_vm13, %v2532_v57, 0.0 }
0x110b   :  { %v2535_v7 = vsel %vm4305_vm15, %v2531_v58, 0.0 }
0x110f   :  { %v2919_v59 = vpop.f32.mrb[26].mxu0 }
0x1110   :  { %v2534_v61 = vmul.f32 %v2919_v59, %v2528_v56  ;;  %v2489_v62 = vpop.f32.mrb[27].mxu0 }
0x1111   :  { %v2533_v63 = vmul.f32 %v2528_v56, %v2489_v62 }
0x1112   :  { %v2539_v6 = vsel %vm4304_vm7, %v2534_v61, 0.0 }
0x1113   :  { %v2540_v54 = vadd.f32 %v2539_v6, %v2538_v1  ;;  %v2536_v8 = vsel %vm4306_vm4, %v2533_v63, 0.0 }
0x1114   :  { %v2537_v44 = vadd.f32 %v2536_v8, %v2535_v7 }
0x1116   :  { %2924 = vmatprep.mubr.msk.f32.mxu1 %vm4307_vm12, %v2537_v44 }
0x1117   :  { %2925 = vmatmul.mubr.msk.f32.vlgmr.msra.gmra.mrb[12].mxu1 %vm4308_vm2, %v2540_v54 }
0x11ea   :  { %v2926_v4 = vpop.f32.mrb[12].mxu1 }
0x11eb   :  { %2624 = vst.msk [vmem:[%s4187_s16 + $0x8] sm:$0xff] %vm2622_vm14, %v2926_v4  ;;  %v2613_v9 = vpop.f32.mrb[13].mxu1 }
0x11ec   :  { %2623 = vst.msk [vmem:[%s4187_s16] sm:$0xff] %vm2622_vm14, %v2613_v9 }
0x11ed   :  { %2629 = vsyncpa [#allocation3], 1 }
0x11ee   :  { %2630 = vsyncpa [#allocation5], 1 }
0x11ef   :  { %2631 = vsyncpa [#allocation8], 1 }
0x11f0   :  { %2632 = vsyncpa [#allocation11], 1 }
0x11f1   :  { %2633 = vsyncpa [#allocation14], 1 }
0x11f2   :  { %2634 = vsyncpa [#allocation17], 1 }

</bundles_post_ra>
